<compile_context>
chip_gen: v7x
topology: tpu7x:2x2x1
jax: 0.10.0
libtpu: 0.0.40
codegen_flags: <defaults>
</compile_context>

<pallas_src>
import math

import jax
import jax.numpy as jnp
from jax.scipy.special import erf
from jax.experimental import pallas as pl
from jax.experimental.pallas import tpu as pltpu

# ---- small ViT config (structure of vit_base_patch16_224, tiny sizes) ----
BATCH = 2
CHANNELS = 3
IMG = 16
PATCH = 4
N_PATCH = (IMG // PATCH) ** 2          # 16 patch tokens per image
SEQ = N_PATCH + 1                      # 17 = patches + CLS
DIM = 32
HEADS = 4
HEAD_DIM = DIM // HEADS
MLP = 4 * DIM                          # 128
DEPTH = 2
EPS = 1e-6                             # timm ViT LayerNorm eps
PATCH_VEC = CHANNELS * PATCH * PATCH   # 48
BIAS_LANES = 128                       # padded lane width of the bias slab


# ----------------------------- kernel helpers ------------------------------
def _ln(x, g, b):
    mu = jnp.mean(x, axis=-1, keepdims=True)
    var = jnp.mean(jnp.square(x - mu), axis=-1, keepdims=True)
    return (x - mu) * jax.lax.rsqrt(var + EPS) * g + b


def _gelu_exact(x):
    # Exact erf-GELU (timm ViT default); erf decomposes to EUP/VPU-served ops.
    return 0.5 * x * (1.0 + erf(x * (1.0 / math.sqrt(2.0))))


# ------------------------------ fused ViT kernel ----------------------------
def vit_kernel(patches_ref, add_ref, patch_w_ref, ln_ref, bias_ref,
               wqkv_ref, wproj_ref, wmlp1_ref, wmlp2_ref, o_ref):
    """One image per grid step: patch-embed -> DEPTH blocks -> final LN."""
    # Patch embedding for all SEQ rows at once.  The CLS row carries a zero
    # patch vector; `add` holds patch_bias + pos[1+i] for patch rows and
    # cls_token + pos[0] for the CLS row, so one matmul + add builds x.
    p = patches_ref[0].astype(jnp.bfloat16)                      # (SEQ, 48)
    x = jnp.dot(p, patch_w_ref[...],
                preferred_element_type=jnp.float32) + add_ref[...]   # (SEQ, D) f32

    # TODO(synk): at DEPTH=12 move depth onto a grid axis / fori_loop over the
    # stacked weights instead of unrolling (vreg live ranges + weight streaming).
    for d in range(DEPTH):
        ln1_g = ln_ref[4 * d + 0: 4 * d + 1, :]
        ln1_b = ln_ref[4 * d + 1: 4 * d + 2, :]
        ln2_g = ln_ref[4 * d + 2: 4 * d + 3, :]
        ln2_b = ln_ref[4 * d + 3: 4 * d + 4, :]

        # --- multi-head self-attention: fused QKV, dense output projection ---
        h = _ln(x, ln1_g, ln1_b)                                  # (SEQ, D) f32
        qkv = jnp.dot(h.astype(jnp.bfloat16), wqkv_ref[d],
                      preferred_element_type=jnp.float32)
        qkv = qkv + bias_ref[d, 0:1, :3 * DIM]                    # (SEQ, 3D)
        q = qkv[:, :DIM]              # 1/sqrt(HEAD_DIM) folded into Wq at init
        k = qkv[:, DIM:2 * DIM]
        v = qkv[:, 2 * DIM:]

        # Per-head scores / weighted sums (HEAD_DIM=8 slices along lanes);
        # heads are merged straight back along lanes, so q/k/v/o stay packed
        # as (SEQ, H*Dh) everywhere except the (SEQ, SEQ) score tile.
        head_outs = []
        for hh in range(HEADS):
            sl = slice(hh * HEAD_DIM, (hh + 1) * HEAD_DIM)
            qh = q[:, sl].astype(jnp.bfloat16)
            kh = k[:, sl].astype(jnp.bfloat16)
            vh = v[:, sl].astype(jnp.bfloat16)
            s = jax.lax.dot_general(qh, kh, (((1,), (1,)), ((), ())),
                                    preferred_element_type=jnp.float32)  # (SEQ, SEQ)
            s = s - jnp.max(s, axis=-1, keepdims=True)            # softmax in f32
            e = jnp.exp(s)
            pr = pl.reciprocal(jnp.sum(e, axis=-1, keepdims=True), approx=True)
            pw = (e * pr).astype(jnp.bfloat16)
            head_outs.append(jnp.dot(pw, vh,
                                     preferred_element_type=jnp.float32))
        o = jnp.concatenate(head_outs, axis=1)                    # (SEQ, D)
        attn = jnp.dot(o.astype(jnp.bfloat16), wproj_ref[d],
                       preferred_element_type=jnp.float32) + bias_ref[d, 1:2, :DIM]
        x = x + attn

        # --- MLP ---
        h2 = _ln(x, ln2_g, ln2_b)
        h2 = jnp.dot(h2.astype(jnp.bfloat16), wmlp1_ref[d],
                     preferred_element_type=jnp.float32) + bias_ref[d, 2:3, :MLP]
        h2 = _gelu_exact(h2)
        h2 = jnp.dot(h2.astype(jnp.bfloat16), wmlp2_ref[d],
                     preferred_element_type=jnp.float32) + bias_ref[d, 3:4, :DIM]
        x = x + h2

    x = _ln(x, ln_ref[4 * DEPTH: 4 * DEPTH + 1, :],
            ln_ref[4 * DEPTH + 1: 4 * DEPTH + 2, :])

    # Patch tokens only (CLS sits at the tail row, so this slice is aligned).
    # TODO(synk): at real sizes stage the store as a lane-dense (…,128) slab.
    o_ref[0] = x[:N_PATCH, :]


# ------------------------------ parameters ---------------------------------
def init_params(key):
    keys = iter(jax.random.split(key, 4 + 4 * DEPTH))

    def nrm(shape):
        return 0.02 * jax.random.normal(next(keys), shape, dtype=jnp.float32)

    def pad_lanes(v):
        return jnp.pad(v, (0, BIAS_LANES - v.shape[0]))

    patch_w = nrm((PATCH_VEC, DIM))          # conv(kernel=stride=patch) as matmul
    patch_b = jnp.zeros((DIM,), jnp.float32)
    cls_tok = nrm((DIM,))
    pos = nrm((SEQ, DIM))

    # Additive term per token row (image-independent): patch rows get
    # patch_bias + pos[1+i]; the tail CLS row gets cls_token + pos[0].
    add = jnp.concatenate(
        [patch_b[None, :] + pos[1:], (cls_tok + pos[0])[None, :]], axis=0)

    scale = 1.0 / math.sqrt(HEAD_DIM)
    q_scale = jnp.concatenate(
        [jnp.full((DIM,), scale, jnp.float32), jnp.ones((2 * DIM,), jnp.float32)])

    ln_rows, bias_rows = [], []
    wqkv_l, wproj_l, w1_l, w2_l = [], [], [], []
    for _ in range(DEPTH):
        wqkv = nrm((DIM, 3 * DIM)) * q_scale[None, :]     # scale folded into Wq
        bqkv = jnp.zeros((3 * DIM,), jnp.float32) * q_scale
        wproj = nrm((DIM, DIM))
        bproj = jnp.zeros((DIM,), jnp.float32)
        w1, b1 = nrm((DIM, MLP)), jnp.zeros((MLP,), jnp.float32)
        w2, b2 = nrm((MLP, DIM)), jnp.zeros((DIM,), jnp.float32)

        ln_rows += [jnp.ones((DIM,), jnp.float32), jnp.zeros((DIM,), jnp.float32),
                    jnp.ones((DIM,), jnp.float32), jnp.zeros((DIM,), jnp.float32)]
        bias_rows.append(jnp.stack(
            [pad_lanes(bqkv), pad_lanes(bproj), pad_lanes(b1), pad_lanes(b2)]))
        wqkv_l.append(wqkv); wproj_l.append(wproj); w1_l.append(w1); w2_l.append(w2)

    ln_rows += [jnp.ones((DIM,), jnp.float32), jnp.zeros((DIM,), jnp.float32)]

    return {
        "patch_w": patch_w.astype(jnp.bfloat16),
        "add": add.astype(jnp.float32),                          # (SEQ, DIM)
        "ln": jnp.stack(ln_rows),                                # (4*DEPTH+2, DIM) f32
        "bias": jnp.stack(bias_rows),                            # (DEPTH, 4, 128) f32
        "wqkv": jnp.stack(wqkv_l).astype(jnp.bfloat16),          # (DEPTH, DIM, 3*DIM)
        "wproj": jnp.stack(wproj_l).astype(jnp.bfloat16),        # (DEPTH, DIM, DIM)
        "wmlp1": jnp.stack(w1_l).astype(jnp.bfloat16),           # (DEPTH, DIM, MLP)
        "wmlp2": jnp.stack(w2_l).astype(jnp.bfloat16),           # (DEPTH, MLP, DIM)
    }


# ------------------------------ forward pass --------------------------------
@jax.jit
def image_encoder_forward(images, params):
    """images: NCHW float32 -> (B, N_PATCH, DIM) patch-token features."""
    B, C, H, W = images.shape
    hp, wp = H // PATCH, W // PATCH

    # im2col: conv(kernel=patch, stride=patch) == per-patch flatten + matmul.
    # Flatten order (C, ph, pw) matches Conv2d weight .reshape(D, C*p*p).T.
    # TODO(synk): at real image sizes express this via the input BlockSpec
    # instead of materializing a transposed copy in HBM.
    patches = images.reshape(B, C, hp, PATCH, wp, PATCH)
    patches = patches.transpose(0, 2, 4, 1, 3, 5).reshape(B, hp * wp, PATCH_VEC)
    # One zero row per image -> becomes the CLS token (tail of the sequence).
    patches = jnp.concatenate(
        [patches, jnp.zeros((B, 1, PATCH_VEC), patches.dtype)], axis=1)  # (B, SEQ, 48)

    out = pl.pallas_call(
        vit_kernel,
        out_shape=jax.ShapeDtypeStruct((B, N_PATCH, DIM), jnp.float32),
        grid=(B,),
        in_specs=[
            pl.BlockSpec((1, SEQ, PATCH_VEC), lambda b: (b, 0, 0)),       # patches
            pl.BlockSpec((SEQ, DIM), lambda b: (0, 0)),                   # add
            pl.BlockSpec((PATCH_VEC, DIM), lambda b: (0, 0)),             # patch_w
            pl.BlockSpec((4 * DEPTH + 2, DIM), lambda b: (0, 0)),         # ln params
            pl.BlockSpec((DEPTH, 4, BIAS_LANES), lambda b: (0, 0, 0)),    # biases
            pl.BlockSpec((DEPTH, DIM, 3 * DIM), lambda b: (0, 0, 0)),     # Wqkv
            pl.BlockSpec((DEPTH, DIM, DIM), lambda b: (0, 0, 0)),         # Wproj
            pl.BlockSpec((DEPTH, DIM, MLP), lambda b: (0, 0, 0)),         # Wmlp1
            pl.BlockSpec((DEPTH, MLP, DIM), lambda b: (0, 0, 0)),         # Wmlp2
        ],
        out_specs=pl.BlockSpec((1, N_PATCH, DIM), lambda b: (b, 0, 0)),
        compiler_params=pltpu.CompilerParams(
            dimension_semantics=("parallel",),   # shards images across TCs on v7x
            vmem_limit_bytes=32 * 1024 * 1024,   # explicit; safe on v5e/v6e/v7x
        ),
    )(patches, params["add"], params["patch_w"], params["ln"], params["bias"],
      params["wqkv"], params["wproj"], params["wmlp1"], params["wmlp2"])

    return out                                                    # CLS already dropped


# ---------------------------------- main ------------------------------------
if __name__ == "__main__":
    key = jax.random.PRNGKey(0)
    k_img, k_par = jax.random.split(key)
    images = jax.random.normal(k_img, (BATCH, CHANNELS, IMG, IMG),
                               dtype=jnp.float32)
    params = init_params(k_par)

    feats = jax.block_until_ready(image_encoder_forward(images, params))

    assert feats.shape == (BATCH, N_PATCH, DIM), feats.shape
    assert bool(jnp.all(jnp.isfinite(feats)))
    print("KERNEL_OK")
</pallas_src>

<mosaic_0001>
module attributes {stable_mosaic.version = 11 : i64} {
  func.func @vit_kernel(%arg0: i32, %arg1: memref<1x17x48xf32, #tpu.memory_space<vmem>>, %arg2: memref<17x32xf32, #tpu.memory_space<vmem>>, %arg3: memref<48x32xbf16, #tpu.memory_space<vmem>>, %arg4: memref<10x32xf32, #tpu.memory_space<vmem>>, %arg5: memref<2x4x128xf32, #tpu.memory_space<vmem>>, %arg6: memref<2x32x96xbf16, #tpu.memory_space<vmem>>, %arg7: memref<2x32x32xbf16, #tpu.memory_space<vmem>>, %arg8: memref<2x32x128xbf16, #tpu.memory_space<vmem>>, %arg9: memref<2x128x32xbf16, #tpu.memory_space<vmem>>, %arg10: memref<1x16x32xf32, #tpu.memory_space<vmem>>) attributes {dimension_semantics = [#tpu.dimension_semantics<parallel>], iteration_bounds = array<i64: 2>, scalar_prefetch = 0 : i64, scratch_operands = 0 : i64, tpu.core_type = #tpu.core_type<tc>, window_params = [{transform_indices = @transform_0, window_bounds = array<i64: 1, 17, 48>}, {pipeline_mode = #tpu.pipeline_mode<synchronous>, transform_indices = @transform_1, window_bounds = array<i64: 17, 32>}, {pipeline_mode = #tpu.pipeline_mode<synchronous>, transform_indices = @transform_2, window_bounds = array<i64: 48, 32>}, {pipeline_mode = #tpu.pipeline_mode<synchronous>, transform_indices = @transform_3, window_bounds = array<i64: 10, 32>}, {pipeline_mode = #tpu.pipeline_mode<synchronous>, transform_indices = @transform_4, window_bounds = array<i64: 2, 4, 128>}, {pipeline_mode = #tpu.pipeline_mode<synchronous>, transform_indices = @transform_5, window_bounds = array<i64: 2, 32, 96>}, {pipeline_mode = #tpu.pipeline_mode<synchronous>, transform_indices = @transform_6, window_bounds = array<i64: 2, 32, 32>}, {pipeline_mode = #tpu.pipeline_mode<synchronous>, transform_indices = @transform_7, window_bounds = array<i64: 2, 32, 128>}, {pipeline_mode = #tpu.pipeline_mode<synchronous>, transform_indices = @transform_8, window_bounds = array<i64: 2, 128, 32>}, {transform_indices = @transform_9, window_bounds = array<i64: 1, 16, 32>}]} {
    %c0 = arith.constant 0 : index
    %c0_0 = arith.constant 0 : index
    %c0_1 = arith.constant 0 : index
    %0 = vector.load %arg1[%c0, %c0_0, %c0_1] : memref<1x17x48xf32, #tpu.memory_space<vmem>>, vector<1x17x48xf32>
    %1 = vector.shape_cast %0 : vector<1x17x48xf32> to vector<17x48xf32>
    %2 = arith.truncf %1 : vector<17x48xf32> to vector<17x48xbf16>
    %c0_2 = arith.constant 0 : index
    %c0_3 = arith.constant 0 : index
    %3 = vector.load %arg3[%c0_2, %c0_3] : memref<48x32xbf16, #tpu.memory_space<vmem>>, vector<48x32xbf16>
    %cst = arith.constant dense<0.000000e+00> : vector<17x32xf32>
    %4 = tpu.matmul %2, %3, %cst {dimension_numbers = #tpu.dot_dimension_numbers<[1], [0], [0], [1], [0, 0, 1, 1], [], []>} : vector<17x48xbf16>, vector<48x32xbf16>, vector<17x32xf32> -> vector<17x32xf32>
    %c0_4 = arith.constant 0 : index
    %c0_5 = arith.constant 0 : index
    %5 = vector.load %arg2[%c0_4, %c0_5] : memref<17x32xf32, #tpu.memory_space<vmem>>, vector<17x32xf32>
    %6 = arith.addf %4, %5 : vector<17x32xf32>
    %c0_6 = arith.constant 0 : index
    %c0_7 = arith.constant 0 : index
    %7 = vector.load %arg4[%c0_6, %c0_7] : memref<10x32xf32, #tpu.memory_space<vmem>>, vector<1x32xf32>
    %c1 = arith.constant 1 : index
    %c0_8 = arith.constant 0 : index
    %8 = vector.load %arg4[%c1, %c0_8] : memref<10x32xf32, #tpu.memory_space<vmem>>, vector<1x32xf32>
    %c2 = arith.constant 2 : index
    %c0_9 = arith.constant 0 : index
    %9 = vector.load %arg4[%c2, %c0_9] : memref<10x32xf32, #tpu.memory_space<vmem>>, vector<1x32xf32>
    %c3 = arith.constant 3 : index
    %c0_10 = arith.constant 0 : index
    %10 = vector.load %arg4[%c3, %c0_10] : memref<10x32xf32, #tpu.memory_space<vmem>>, vector<1x32xf32>
    %cst_11 = arith.constant dense<0.000000e+00> : vector<17xf32>
    %11 = vector.multi_reduction <add>, %6, %cst_11 [1] : vector<17x32xf32> to vector<17xf32>
    %12 = vector.shape_cast %11 : vector<17xf32> to vector<17x1xf32>
    %cst_12 = arith.constant 3.200000e+01 : f32
    %13 = vector.broadcast %cst_12 : f32 to vector<17x1xf32>
    %14 = arith.divf %12, %13 : vector<17x1xf32>
    %15 = vector.broadcast %14 : vector<17x1xf32> to vector<17x32xf32>
    %16 = arith.subf %6, %15 : vector<17x32xf32>
    %17 = arith.mulf %16, %16 : vector<17x32xf32>
    %cst_13 = arith.constant dense<0.000000e+00> : vector<17xf32>
    %18 = vector.multi_reduction <add>, %17, %cst_13 [1] : vector<17x32xf32> to vector<17xf32>
    %19 = vector.shape_cast %18 : vector<17xf32> to vector<17x1xf32>
    %cst_14 = arith.constant 3.200000e+01 : f32
    %20 = vector.broadcast %cst_14 : f32 to vector<17x1xf32>
    %21 = arith.divf %19, %20 : vector<17x1xf32>
    %22 = vector.broadcast %14 : vector<17x1xf32> to vector<17x32xf32>
    %23 = arith.subf %6, %22 : vector<17x32xf32>
    %cst_15 = arith.constant 9.99999997E-7 : f32
    %24 = vector.broadcast %cst_15 : f32 to vector<17x1xf32>
    %25 = arith.addf %21, %24 : vector<17x1xf32>
    %26 = math.rsqrt %25 : vector<17x1xf32>
    %27 = vector.broadcast %26 : vector<17x1xf32> to vector<17x32xf32>
    %28 = arith.mulf %23, %27 : vector<17x32xf32>
    %29 = vector.broadcast %7 : vector<1x32xf32> to vector<17x32xf32>
    %30 = arith.mulf %28, %29 : vector<17x32xf32>
    %31 = vector.broadcast %8 : vector<1x32xf32> to vector<17x32xf32>
    %32 = arith.addf %30, %31 : vector<17x32xf32>
    %33 = arith.truncf %32 : vector<17x32xf32> to vector<17x32xbf16>
    %c0_16 = arith.constant 0 : index
    %c0_17 = arith.constant 0 : index
    %c0_18 = arith.constant 0 : index
    %34 = vector.load %arg6[%c0_16, %c0_17, %c0_18] : memref<2x32x96xbf16, #tpu.memory_space<vmem>>, vector<1x32x96xbf16>
    %35 = vector.shape_cast %34 : vector<1x32x96xbf16> to vector<32x96xbf16>
    %cst_19 = arith.constant dense<0.000000e+00> : vector<17x96xf32>
    %36 = tpu.matmul %33, %35, %cst_19 {dimension_numbers = #tpu.dot_dimension_numbers<[1], [0], [0], [1], [0, 0, 1, 1], [], []>} : vector<17x32xbf16>, vector<32x96xbf16>, vector<17x96xf32> -> vector<17x96xf32>
    %c0_20 = arith.constant 0 : index
    %c0_21 = arith.constant 0 : index
    %c0_22 = arith.constant 0 : index
    %37 = vector.load %arg5[%c0_20, %c0_21, %c0_22] : memref<2x4x128xf32, #tpu.memory_space<vmem>>, vector<1x1x96xf32>
    %38 = vector.shape_cast %37 : vector<1x1x96xf32> to vector<1x96xf32>
    %39 = vector.broadcast %38 : vector<1x96xf32> to vector<17x96xf32>
    %40 = arith.addf %36, %39 : vector<17x96xf32>
    %41 = vector.extract_strided_slice %40 {offsets = [0, 0], sizes = [17, 32], strides = [1, 1]} : vector<17x96xf32> to vector<17x32xf32>
    %42 = vector.extract_strided_slice %40 {offsets = [0, 32], sizes = [17, 32], strides = [1, 1]} : vector<17x96xf32> to vector<17x32xf32>
    %43 = vector.extract_strided_slice %40 {offsets = [0, 64], sizes = [17, 32], strides = [1, 1]} : vector<17x96xf32> to vector<17x32xf32>
    %44 = vector.extract_strided_slice %41 {offsets = [0, 0], sizes = [17, 8], strides = [1, 1]} : vector<17x32xf32> to vector<17x8xf32>
    %45 = arith.truncf %44 : vector<17x8xf32> to vector<17x8xbf16>
    %46 = vector.extract_strided_slice %42 {offsets = [0, 0], sizes = [17, 8], strides = [1, 1]} : vector<17x32xf32> to vector<17x8xf32>
    %47 = arith.truncf %46 : vector<17x8xf32> to vector<17x8xbf16>
    %48 = vector.extract_strided_slice %43 {offsets = [0, 0], sizes = [17, 8], strides = [1, 1]} : vector<17x32xf32> to vector<17x8xf32>
    %49 = arith.truncf %48 : vector<17x8xf32> to vector<17x8xbf16>
    %cst_23 = arith.constant dense<0.000000e+00> : vector<17x17xf32>
    %50 = tpu.matmul %45, %47, %cst_23 {dimension_numbers = #tpu.dot_dimension_numbers<[1], [1], [0], [0], [0, 0, 1, 0], [], []>} : vector<17x8xbf16>, vector<17x8xbf16>, vector<17x17xf32> -> vector<17x17xf32>
    %cst_24 = arith.constant dense<0xFF800000> : vector<17xf32>
    %51 = vector.multi_reduction <maximumf>, %50, %cst_24 [1] : vector<17x17xf32> to vector<17xf32>
    %52 = vector.shape_cast %51 : vector<17xf32> to vector<17x1xf32>
    %53 = vector.broadcast %52 : vector<17x1xf32> to vector<17x17xf32>
    %54 = arith.subf %50, %53 : vector<17x17xf32>
    %55 = math.exp %54 : vector<17x17xf32>
    %cst_25 = arith.constant dense<0.000000e+00> : vector<17xf32>
    %56 = vector.multi_reduction <add>, %55, %cst_25 [1] : vector<17x17xf32> to vector<17xf32>
    %57 = vector.shape_cast %56 : vector<17xf32> to vector<17x1xf32>
    %58 = tpu.reciprocal %57 {approx = true} : vector<17x1xf32> -> vector<17x1xf32>
    %59 = vector.broadcast %58 : vector<17x1xf32> to vector<17x17xf32>
    %60 = arith.mulf %55, %59 : vector<17x17xf32>
    %61 = arith.truncf %60 : vector<17x17xf32> to vector<17x17xbf16>
    %cst_26 = arith.constant dense<0.000000e+00> : vector<17x8xf32>
    %62 = tpu.matmul %61, %49, %cst_26 {dimension_numbers = #tpu.dot_dimension_numbers<[1], [0], [0], [1], [0, 0, 1, 1], [], []>} : vector<17x17xbf16>, vector<17x8xbf16>, vector<17x8xf32> -> vector<17x8xf32>
    %63 = vector.extract_strided_slice %41 {offsets = [0, 8], sizes = [17, 8], strides = [1, 1]} : vector<17x32xf32> to vector<17x8xf32>
    %64 = arith.truncf %63 : vector<17x8xf32> to vector<17x8xbf16>
    %65 = vector.extract_strided_slice %42 {offsets = [0, 8], sizes = [17, 8], strides = [1, 1]} : vector<17x32xf32> to vector<17x8xf32>
    %66 = arith.truncf %65 : vector<17x8xf32> to vector<17x8xbf16>
    %67 = vector.extract_strided_slice %43 {offsets = [0, 8], sizes = [17, 8], strides = [1, 1]} : vector<17x32xf32> to vector<17x8xf32>
    %68 = arith.truncf %67 : vector<17x8xf32> to vector<17x8xbf16>
    %cst_27 = arith.constant dense<0.000000e+00> : vector<17x17xf32>
    %69 = tpu.matmul %64, %66, %cst_27 {dimension_numbers = #tpu.dot_dimension_numbers<[1], [1], [0], [0], [0, 0, 1, 0], [], []>} : vector<17x8xbf16>, vector<17x8xbf16>, vector<17x17xf32> -> vector<17x17xf32>
    %cst_28 = arith.constant dense<0xFF800000> : vector<17xf32>
    %70 = vector.multi_reduction <maximumf>, %69, %cst_28 [1] : vector<17x17xf32> to vector<17xf32>
    %71 = vector.shape_cast %70 : vector<17xf32> to vector<17x1xf32>
    %72 = vector.broadcast %71 : vector<17x1xf32> to vector<17x17xf32>
    %73 = arith.subf %69, %72 : vector<17x17xf32>
    %74 = math.exp %73 : vector<17x17xf32>
    %cst_29 = arith.constant dense<0.000000e+00> : vector<17xf32>
    %75 = vector.multi_reduction <add>, %74, %cst_29 [1] : vector<17x17xf32> to vector<17xf32>
    %76 = vector.shape_cast %75 : vector<17xf32> to vector<17x1xf32>
    %77 = tpu.reciprocal %76 {approx = true} : vector<17x1xf32> -> vector<17x1xf32>
    %78 = vector.broadcast %77 : vector<17x1xf32> to vector<17x17xf32>
    %79 = arith.mulf %74, %78 : vector<17x17xf32>
    %80 = arith.truncf %79 : vector<17x17xf32> to vector<17x17xbf16>
    %cst_30 = arith.constant dense<0.000000e+00> : vector<17x8xf32>
    %81 = tpu.matmul %80, %68, %cst_30 {dimension_numbers = #tpu.dot_dimension_numbers<[1], [0], [0], [1], [0, 0, 1, 1], [], []>} : vector<17x17xbf16>, vector<17x8xbf16>, vector<17x8xf32> -> vector<17x8xf32>
    %82 = vector.extract_strided_slice %41 {offsets = [0, 16], sizes = [17, 8], strides = [1, 1]} : vector<17x32xf32> to vector<17x8xf32>
    %83 = arith.truncf %82 : vector<17x8xf32> to vector<17x8xbf16>
    %84 = vector.extract_strided_slice %42 {offsets = [0, 16], sizes = [17, 8], strides = [1, 1]} : vector<17x32xf32> to vector<17x8xf32>
    %85 = arith.truncf %84 : vector<17x8xf32> to vector<17x8xbf16>
    %86 = vector.extract_strided_slice %43 {offsets = [0, 16], sizes = [17, 8], strides = [1, 1]} : vector<17x32xf32> to vector<17x8xf32>
    %87 = arith.truncf %86 : vector<17x8xf32> to vector<17x8xbf16>
    %cst_31 = arith.constant dense<0.000000e+00> : vector<17x17xf32>
    %88 = tpu.matmul %83, %85, %cst_31 {dimension_numbers = #tpu.dot_dimension_numbers<[1], [1], [0], [0], [0, 0, 1, 0], [], []>} : vector<17x8xbf16>, vector<17x8xbf16>, vector<17x17xf32> -> vector<17x17xf32>
    %cst_32 = arith.constant dense<0xFF800000> : vector<17xf32>
    %89 = vector.multi_reduction <maximumf>, %88, %cst_32 [1] : vector<17x17xf32> to vector<17xf32>
    %90 = vector.shape_cast %89 : vector<17xf32> to vector<17x1xf32>
    %91 = vector.broadcast %90 : vector<17x1xf32> to vector<17x17xf32>
    %92 = arith.subf %88, %91 : vector<17x17xf32>
    %93 = math.exp %92 : vector<17x17xf32>
    %cst_33 = arith.constant dense<0.000000e+00> : vector<17xf32>
    %94 = vector.multi_reduction <add>, %93, %cst_33 [1] : vector<17x17xf32> to vector<17xf32>
    %95 = vector.shape_cast %94 : vector<17xf32> to vector<17x1xf32>
    %96 = tpu.reciprocal %95 {approx = true} : vector<17x1xf32> -> vector<17x1xf32>
    %97 = vector.broadcast %96 : vector<17x1xf32> to vector<17x17xf32>
    %98 = arith.mulf %93, %97 : vector<17x17xf32>
    %99 = arith.truncf %98 : vector<17x17xf32> to vector<17x17xbf16>
    %cst_34 = arith.constant dense<0.000000e+00> : vector<17x8xf32>
    %100 = tpu.matmul %99, %87, %cst_34 {dimension_numbers = #tpu.dot_dimension_numbers<[1], [0], [0], [1], [0, 0, 1, 1], [], []>} : vector<17x17xbf16>, vector<17x8xbf16>, vector<17x8xf32> -> vector<17x8xf32>
    %101 = vector.extract_strided_slice %41 {offsets = [0, 24], sizes = [17, 8], strides = [1, 1]} : vector<17x32xf32> to vector<17x8xf32>
    %102 = arith.truncf %101 : vector<17x8xf32> to vector<17x8xbf16>
    %103 = vector.extract_strided_slice %42 {offsets = [0, 24], sizes = [17, 8], strides = [1, 1]} : vector<17x32xf32> to vector<17x8xf32>
    %104 = arith.truncf %103 : vector<17x8xf32> to vector<17x8xbf16>
    %105 = vector.extract_strided_slice %43 {offsets = [0, 24], sizes = [17, 8], strides = [1, 1]} : vector<17x32xf32> to vector<17x8xf32>
    %106 = arith.truncf %105 : vector<17x8xf32> to vector<17x8xbf16>
    %cst_35 = arith.constant dense<0.000000e+00> : vector<17x17xf32>
    %107 = tpu.matmul %102, %104, %cst_35 {dimension_numbers = #tpu.dot_dimension_numbers<[1], [1], [0], [0], [0, 0, 1, 0], [], []>} : vector<17x8xbf16>, vector<17x8xbf16>, vector<17x17xf32> -> vector<17x17xf32>
    %cst_36 = arith.constant dense<0xFF800000> : vector<17xf32>
    %108 = vector.multi_reduction <maximumf>, %107, %cst_36 [1] : vector<17x17xf32> to vector<17xf32>
    %109 = vector.shape_cast %108 : vector<17xf32> to vector<17x1xf32>
    %110 = vector.broadcast %109 : vector<17x1xf32> to vector<17x17xf32>
    %111 = arith.subf %107, %110 : vector<17x17xf32>
    %112 = math.exp %111 : vector<17x17xf32>
    %cst_37 = arith.constant dense<0.000000e+00> : vector<17xf32>
    %113 = vector.multi_reduction <add>, %112, %cst_37 [1] : vector<17x17xf32> to vector<17xf32>
    %114 = vector.shape_cast %113 : vector<17xf32> to vector<17x1xf32>
    %115 = tpu.reciprocal %114 {approx = true} : vector<17x1xf32> -> vector<17x1xf32>
    %116 = vector.broadcast %115 : vector<17x1xf32> to vector<17x17xf32>
    %117 = arith.mulf %112, %116 : vector<17x17xf32>
    %118 = arith.truncf %117 : vector<17x17xf32> to vector<17x17xbf16>
    %cst_38 = arith.constant dense<0.000000e+00> : vector<17x8xf32>
    %119 = tpu.matmul %118, %106, %cst_38 {dimension_numbers = #tpu.dot_dimension_numbers<[1], [0], [0], [1], [0, 0, 1, 1], [], []>} : vector<17x17xbf16>, vector<17x8xbf16>, vector<17x8xf32> -> vector<17x8xf32>
    %120 = tpu.concatenate %62, %81, %100, %119 in 1 : vector<17x8xf32>, vector<17x8xf32>, vector<17x8xf32>, vector<17x8xf32> -> vector<17x32xf32>
    %121 = arith.truncf %120 : vector<17x32xf32> to vector<17x32xbf16>
    %c0_39 = arith.constant 0 : index
    %c0_40 = arith.constant 0 : index
    %c0_41 = arith.constant 0 : index
    %122 = vector.load %arg7[%c0_39, %c0_40, %c0_41] : memref<2x32x32xbf16, #tpu.memory_space<vmem>>, vector<1x32x32xbf16>
    %123 = vector.shape_cast %122 : vector<1x32x32xbf16> to vector<32x32xbf16>
    %cst_42 = arith.constant dense<0.000000e+00> : vector<17x32xf32>
    %124 = tpu.matmul %121, %123, %cst_42 {dimension_numbers = #tpu.dot_dimension_numbers<[1], [0], [0], [1], [0, 0, 1, 1], [], []>} : vector<17x32xbf16>, vector<32x32xbf16>, vector<17x32xf32> -> vector<17x32xf32>
    %c0_43 = arith.constant 0 : index
    %c1_44 = arith.constant 1 : index
    %c0_45 = arith.constant 0 : index
    %125 = vector.load %arg5[%c0_43, %c1_44, %c0_45] : memref<2x4x128xf32, #tpu.memory_space<vmem>>, vector<1x1x32xf32>
    %126 = vector.shape_cast %125 : vector<1x1x32xf32> to vector<1x32xf32>
    %127 = vector.broadcast %126 : vector<1x32xf32> to vector<17x32xf32>
    %128 = arith.addf %124, %127 : vector<17x32xf32>
    %129 = arith.addf %6, %128 : vector<17x32xf32>
    %cst_46 = arith.constant dense<0.000000e+00> : vector<17xf32>
    %130 = vector.multi_reduction <add>, %129, %cst_46 [1] : vector<17x32xf32> to vector<17xf32>
    %131 = vector.shape_cast %130 : vector<17xf32> to vector<17x1xf32>
    %cst_47 = arith.constant 3.200000e+01 : f32
    %132 = vector.broadcast %cst_47 : f32 to vector<17x1xf32>
    %133 = arith.divf %131, %132 : vector<17x1xf32>
    %134 = vector.broadcast %133 : vector<17x1xf32> to vector<17x32xf32>
    %135 = arith.subf %129, %134 : vector<17x32xf32>
    %136 = arith.mulf %135, %135 : vector<17x32xf32>
    %cst_48 = arith.constant dense<0.000000e+00> : vector<17xf32>
    %137 = vector.multi_reduction <add>, %136, %cst_48 [1] : vector<17x32xf32> to vector<17xf32>
    %138 = vector.shape_cast %137 : vector<17xf32> to vector<17x1xf32>
    %cst_49 = arith.constant 3.200000e+01 : f32
    %139 = vector.broadcast %cst_49 : f32 to vector<17x1xf32>
    %140 = arith.divf %138, %139 : vector<17x1xf32>
    %141 = vector.broadcast %133 : vector<17x1xf32> to vector<17x32xf32>
    %142 = arith.subf %129, %141 : vector<17x32xf32>
    %cst_50 = arith.constant 9.99999997E-7 : f32
    %143 = vector.broadcast %cst_50 : f32 to vector<17x1xf32>
    %144 = arith.addf %140, %143 : vector<17x1xf32>
    %145 = math.rsqrt %144 : vector<17x1xf32>
    %146 = vector.broadcast %145 : vector<17x1xf32> to vector<17x32xf32>
    %147 = arith.mulf %142, %146 : vector<17x32xf32>
    %148 = vector.broadcast %9 : vector<1x32xf32> to vector<17x32xf32>
    %149 = arith.mulf %147, %148 : vector<17x32xf32>
    %150 = vector.broadcast %10 : vector<1x32xf32> to vector<17x32xf32>
    %151 = arith.addf %149, %150 : vector<17x32xf32>
    %152 = arith.truncf %151 : vector<17x32xf32> to vector<17x32xbf16>
    %c0_51 = arith.constant 0 : index
    %c0_52 = arith.constant 0 : index
    %c0_53 = arith.constant 0 : index
    %153 = vector.load %arg8[%c0_51, %c0_52, %c0_53] : memref<2x32x128xbf16, #tpu.memory_space<vmem>>, vector<1x32x128xbf16>
    %154 = vector.shape_cast %153 : vector<1x32x128xbf16> to vector<32x128xbf16>
    %cst_54 = arith.constant dense<0.000000e+00> : vector<17x128xf32>
    %155 = tpu.matmul %152, %154, %cst_54 {dimension_numbers = #tpu.dot_dimension_numbers<[1], [0], [0], [1], [0, 0, 1, 1], [], []>} : vector<17x32xbf16>, vector<32x128xbf16>, vector<17x128xf32> -> vector<17x128xf32>
    %c0_55 = arith.constant 0 : index
    %c2_56 = arith.constant 2 : index
    %c0_57 = arith.constant 0 : index
    %156 = vector.load %arg5[%c0_55, %c2_56, %c0_57] : memref<2x4x128xf32, #tpu.memory_space<vmem>>, vector<1x1x128xf32>
    %157 = vector.shape_cast %156 : vector<1x1x128xf32> to vector<1x128xf32>
    %158 = vector.broadcast %157 : vector<1x128xf32> to vector<17x128xf32>
    %159 = arith.addf %155, %158 : vector<17x128xf32>
    %cst_58 = arith.constant 5.000000e-01 : f32
    %160 = vector.broadcast %cst_58 : f32 to vector<17x128xf32>
    %161 = arith.mulf %160, %159 : vector<17x128xf32>
    %cst_59 = arith.constant 0.707106769 : f32
    %162 = vector.broadcast %cst_59 : f32 to vector<17x128xf32>
    %163 = arith.mulf %159, %162 : vector<17x128xf32>
    %164 = math.erf %163 : vector<17x128xf32>
    %cst_60 = arith.constant 1.000000e+00 : f32
    %165 = vector.broadcast %cst_60 : f32 to vector<17x128xf32>
    %166 = arith.addf %165, %164 : vector<17x128xf32>
    %167 = arith.mulf %161, %166 : vector<17x128xf32>
    %168 = arith.truncf %167 : vector<17x128xf32> to vector<17x128xbf16>
    %c0_61 = arith.constant 0 : index
    %c0_62 = arith.constant 0 : index
    %c0_63 = arith.constant 0 : index
    %169 = vector.load %arg9[%c0_61, %c0_62, %c0_63] : memref<2x128x32xbf16, #tpu.memory_space<vmem>>, vector<1x128x32xbf16>
    %170 = vector.shape_cast %169 : vector<1x128x32xbf16> to vector<128x32xbf16>
    %cst_64 = arith.constant dense<0.000000e+00> : vector<17x32xf32>
    %171 = tpu.matmul %168, %170, %cst_64 {dimension_numbers = #tpu.dot_dimension_numbers<[1], [0], [0], [1], [0, 0, 1, 1], [], []>} : vector<17x128xbf16>, vector<128x32xbf16>, vector<17x32xf32> -> vector<17x32xf32>
    %c0_65 = arith.constant 0 : index
    %c3_66 = arith.constant 3 : index
    %c0_67 = arith.constant 0 : index
    %172 = vector.load %arg5[%c0_65, %c3_66, %c0_67] : memref<2x4x128xf32, #tpu.memory_space<vmem>>, vector<1x1x32xf32>
    %173 = vector.shape_cast %172 : vector<1x1x32xf32> to vector<1x32xf32>
    %174 = vector.broadcast %173 : vector<1x32xf32> to vector<17x32xf32>
    %175 = arith.addf %171, %174 : vector<17x32xf32>
    %176 = arith.addf %129, %175 : vector<17x32xf32>
    %c4 = arith.constant 4 : index
    %c0_68 = arith.constant 0 : index
    %177 = vector.load %arg4[%c4, %c0_68] : memref<10x32xf32, #tpu.memory_space<vmem>>, vector<1x32xf32>
    %c5 = arith.constant 5 : index
    %c0_69 = arith.constant 0 : index
    %178 = vector.load %arg4[%c5, %c0_69] : memref<10x32xf32, #tpu.memory_space<vmem>>, vector<1x32xf32>
    %c6 = arith.constant 6 : index
    %c0_70 = arith.constant 0 : index
    %179 = vector.load %arg4[%c6, %c0_70] : memref<10x32xf32, #tpu.memory_space<vmem>>, vector<1x32xf32>
    %c7 = arith.constant 7 : index
    %c0_71 = arith.constant 0 : index
    %180 = vector.load %arg4[%c7, %c0_71] : memref<10x32xf32, #tpu.memory_space<vmem>>, vector<1x32xf32>
    %cst_72 = arith.constant dense<0.000000e+00> : vector<17xf32>
    %181 = vector.multi_reduction <add>, %176, %cst_72 [1] : vector<17x32xf32> to vector<17xf32>
    %182 = vector.shape_cast %181 : vector<17xf32> to vector<17x1xf32>
    %cst_73 = arith.constant 3.200000e+01 : f32
    %183 = vector.broadcast %cst_73 : f32 to vector<17x1xf32>
    %184 = arith.divf %182, %183 : vector<17x1xf32>
    %185 = vector.broadcast %184 : vector<17x1xf32> to vector<17x32xf32>
    %186 = arith.subf %176, %185 : vector<17x32xf32>
    %187 = arith.mulf %186, %186 : vector<17x32xf32>
    %cst_74 = arith.constant dense<0.000000e+00> : vector<17xf32>
    %188 = vector.multi_reduction <add>, %187, %cst_74 [1] : vector<17x32xf32> to vector<17xf32>
    %189 = vector.shape_cast %188 : vector<17xf32> to vector<17x1xf32>
    %cst_75 = arith.constant 3.200000e+01 : f32
    %190 = vector.broadcast %cst_75 : f32 to vector<17x1xf32>
    %191 = arith.divf %189, %190 : vector<17x1xf32>
    %192 = vector.broadcast %184 : vector<17x1xf32> to vector<17x32xf32>
    %193 = arith.subf %176, %192 : vector<17x32xf32>
    %cst_76 = arith.constant 9.99999997E-7 : f32
    %194 = vector.broadcast %cst_76 : f32 to vector<17x1xf32>
    %195 = arith.addf %191, %194 : vector<17x1xf32>
    %196 = math.rsqrt %195 : vector<17x1xf32>
    %197 = vector.broadcast %196 : vector<17x1xf32> to vector<17x32xf32>
    %198 = arith.mulf %193, %197 : vector<17x32xf32>
    %199 = vector.broadcast %177 : vector<1x32xf32> to vector<17x32xf32>
    %200 = arith.mulf %198, %199 : vector<17x32xf32>
    %201 = vector.broadcast %178 : vector<1x32xf32> to vector<17x32xf32>
    %202 = arith.addf %200, %201 : vector<17x32xf32>
    %203 = arith.truncf %202 : vector<17x32xf32> to vector<17x32xbf16>
    %c1_77 = arith.constant 1 : index
    %c0_78 = arith.constant 0 : index
    %c0_79 = arith.constant 0 : index
    %204 = vector.load %arg6[%c1_77, %c0_78, %c0_79] : memref<2x32x96xbf16, #tpu.memory_space<vmem>>, vector<1x32x96xbf16>
    %205 = vector.shape_cast %204 : vector<1x32x96xbf16> to vector<32x96xbf16>
    %cst_80 = arith.constant dense<0.000000e+00> : vector<17x96xf32>
    %206 = tpu.matmul %203, %205, %cst_80 {dimension_numbers = #tpu.dot_dimension_numbers<[1], [0], [0], [1], [0, 0, 1, 1], [], []>} : vector<17x32xbf16>, vector<32x96xbf16>, vector<17x96xf32> -> vector<17x96xf32>
    %c1_81 = arith.constant 1 : index
    %c0_82 = arith.constant 0 : index
    %c0_83 = arith.constant 0 : index
    %207 = vector.load %arg5[%c1_81, %c0_82, %c0_83] : memref<2x4x128xf32, #tpu.memory_space<vmem>>, vector<1x1x96xf32>
    %208 = vector.shape_cast %207 : vector<1x1x96xf32> to vector<1x96xf32>
    %209 = vector.broadcast %208 : vector<1x96xf32> to vector<17x96xf32>
    %210 = arith.addf %206, %209 : vector<17x96xf32>
    %211 = vector.extract_strided_slice %210 {offsets = [0, 0], sizes = [17, 32], strides = [1, 1]} : vector<17x96xf32> to vector<17x32xf32>
    %212 = vector.extract_strided_slice %210 {offsets = [0, 32], sizes = [17, 32], strides = [1, 1]} : vector<17x96xf32> to vector<17x32xf32>
    %213 = vector.extract_strided_slice %210 {offsets = [0, 64], sizes = [17, 32], strides = [1, 1]} : vector<17x96xf32> to vector<17x32xf32>
    %214 = vector.extract_strided_slice %211 {offsets = [0, 0], sizes = [17, 8], strides = [1, 1]} : vector<17x32xf32> to vector<17x8xf32>
    %215 = arith.truncf %214 : vector<17x8xf32> to vector<17x8xbf16>
    %216 = vector.extract_strided_slice %212 {offsets = [0, 0], sizes = [17, 8], strides = [1, 1]} : vector<17x32xf32> to vector<17x8xf32>
    %217 = arith.truncf %216 : vector<17x8xf32> to vector<17x8xbf16>
    %218 = vector.extract_strided_slice %213 {offsets = [0, 0], sizes = [17, 8], strides = [1, 1]} : vector<17x32xf32> to vector<17x8xf32>
    %219 = arith.truncf %218 : vector<17x8xf32> to vector<17x8xbf16>
    %cst_84 = arith.constant dense<0.000000e+00> : vector<17x17xf32>
    %220 = tpu.matmul %215, %217, %cst_84 {dimension_numbers = #tpu.dot_dimension_numbers<[1], [1], [0], [0], [0, 0, 1, 0], [], []>} : vector<17x8xbf16>, vector<17x8xbf16>, vector<17x17xf32> -> vector<17x17xf32>
    %cst_85 = arith.constant dense<0xFF800000> : vector<17xf32>
    %221 = vector.multi_reduction <maximumf>, %220, %cst_85 [1] : vector<17x17xf32> to vector<17xf32>
    %222 = vector.shape_cast %221 : vector<17xf32> to vector<17x1xf32>
    %223 = vector.broadcast %222 : vector<17x1xf32> to vector<17x17xf32>
    %224 = arith.subf %220, %223 : vector<17x17xf32>
    %225 = math.exp %224 : vector<17x17xf32>
    %cst_86 = arith.constant dense<0.000000e+00> : vector<17xf32>
    %226 = vector.multi_reduction <add>, %225, %cst_86 [1] : vector<17x17xf32> to vector<17xf32>
    %227 = vector.shape_cast %226 : vector<17xf32> to vector<17x1xf32>
    %228 = tpu.reciprocal %227 {approx = true} : vector<17x1xf32> -> vector<17x1xf32>
    %229 = vector.broadcast %228 : vector<17x1xf32> to vector<17x17xf32>
    %230 = arith.mulf %225, %229 : vector<17x17xf32>
    %231 = arith.truncf %230 : vector<17x17xf32> to vector<17x17xbf16>
    %cst_87 = arith.constant dense<0.000000e+00> : vector<17x8xf32>
    %232 = tpu.matmul %231, %219, %cst_87 {dimension_numbers = #tpu.dot_dimension_numbers<[1], [0], [0], [1], [0, 0, 1, 1], [], []>} : vector<17x17xbf16>, vector<17x8xbf16>, vector<17x8xf32> -> vector<17x8xf32>
    %233 = vector.extract_strided_slice %211 {offsets = [0, 8], sizes = [17, 8], strides = [1, 1]} : vector<17x32xf32> to vector<17x8xf32>
    %234 = arith.truncf %233 : vector<17x8xf32> to vector<17x8xbf16>
    %235 = vector.extract_strided_slice %212 {offsets = [0, 8], sizes = [17, 8], strides = [1, 1]} : vector<17x32xf32> to vector<17x8xf32>
    %236 = arith.truncf %235 : vector<17x8xf32> to vector<17x8xbf16>
    %237 = vector.extract_strided_slice %213 {offsets = [0, 8], sizes = [17, 8], strides = [1, 1]} : vector<17x32xf32> to vector<17x8xf32>
    %238 = arith.truncf %237 : vector<17x8xf32> to vector<17x8xbf16>
    %cst_88 = arith.constant dense<0.000000e+00> : vector<17x17xf32>
    %239 = tpu.matmul %234, %236, %cst_88 {dimension_numbers = #tpu.dot_dimension_numbers<[1], [1], [0], [0], [0, 0, 1, 0], [], []>} : vector<17x8xbf16>, vector<17x8xbf16>, vector<17x17xf32> -> vector<17x17xf32>
    %cst_89 = arith.constant dense<0xFF800000> : vector<17xf32>
    %240 = vector.multi_reduction <maximumf>, %239, %cst_89 [1] : vector<17x17xf32> to vector<17xf32>
    %241 = vector.shape_cast %240 : vector<17xf32> to vector<17x1xf32>
    %242 = vector.broadcast %241 : vector<17x1xf32> to vector<17x17xf32>
    %243 = arith.subf %239, %242 : vector<17x17xf32>
    %244 = math.exp %243 : vector<17x17xf32>
    %cst_90 = arith.constant dense<0.000000e+00> : vector<17xf32>
    %245 = vector.multi_reduction <add>, %244, %cst_90 [1] : vector<17x17xf32> to vector<17xf32>
    %246 = vector.shape_cast %245 : vector<17xf32> to vector<17x1xf32>
    %247 = tpu.reciprocal %246 {approx = true} : vector<17x1xf32> -> vector<17x1xf32>
    %248 = vector.broadcast %247 : vector<17x1xf32> to vector<17x17xf32>
    %249 = arith.mulf %244, %248 : vector<17x17xf32>
    %250 = arith.truncf %249 : vector<17x17xf32> to vector<17x17xbf16>
    %cst_91 = arith.constant dense<0.000000e+00> : vector<17x8xf32>
    %251 = tpu.matmul %250, %238, %cst_91 {dimension_numbers = #tpu.dot_dimension_numbers<[1], [0], [0], [1], [0, 0, 1, 1], [], []>} : vector<17x17xbf16>, vector<17x8xbf16>, vector<17x8xf32> -> vector<17x8xf32>
    %252 = vector.extract_strided_slice %211 {offsets = [0, 16], sizes = [17, 8], strides = [1, 1]} : vector<17x32xf32> to vector<17x8xf32>
    %253 = arith.truncf %252 : vector<17x8xf32> to vector<17x8xbf16>
    %254 = vector.extract_strided_slice %212 {offsets = [0, 16], sizes = [17, 8], strides = [1, 1]} : vector<17x32xf32> to vector<17x8xf32>
    %255 = arith.truncf %254 : vector<17x8xf32> to vector<17x8xbf16>
    %256 = vector.extract_strided_slice %213 {offsets = [0, 16], sizes = [17, 8], strides = [1, 1]} : vector<17x32xf32> to vector<17x8xf32>
    %257 = arith.truncf %256 : vector<17x8xf32> to vector<17x8xbf16>
    %cst_92 = arith.constant dense<0.000000e+00> : vector<17x17xf32>
    %258 = tpu.matmul %253, %255, %cst_92 {dimension_numbers = #tpu.dot_dimension_numbers<[1], [1], [0], [0], [0, 0, 1, 0], [], []>} : vector<17x8xbf16>, vector<17x8xbf16>, vector<17x17xf32> -> vector<17x17xf32>
    %cst_93 = arith.constant dense<0xFF800000> : vector<17xf32>
    %259 = vector.multi_reduction <maximumf>, %258, %cst_93 [1] : vector<17x17xf32> to vector<17xf32>
    %260 = vector.shape_cast %259 : vector<17xf32> to vector<17x1xf32>
    %261 = vector.broadcast %260 : vector<17x1xf32> to vector<17x17xf32>
    %262 = arith.subf %258, %261 : vector<17x17xf32>
    %263 = math.exp %262 : vector<17x17xf32>
    %cst_94 = arith.constant dense<0.000000e+00> : vector<17xf32>
    %264 = vector.multi_reduction <add>, %263, %cst_94 [1] : vector<17x17xf32> to vector<17xf32>
    %265 = vector.shape_cast %264 : vector<17xf32> to vector<17x1xf32>
    %266 = tpu.reciprocal %265 {approx = true} : vector<17x1xf32> -> vector<17x1xf32>
    %267 = vector.broadcast %266 : vector<17x1xf32> to vector<17x17xf32>
    %268 = arith.mulf %263, %267 : vector<17x17xf32>
    %269 = arith.truncf %268 : vector<17x17xf32> to vector<17x17xbf16>
    %cst_95 = arith.constant dense<0.000000e+00> : vector<17x8xf32>
    %270 = tpu.matmul %269, %257, %cst_95 {dimension_numbers = #tpu.dot_dimension_numbers<[1], [0], [0], [1], [0, 0, 1, 1], [], []>} : vector<17x17xbf16>, vector<17x8xbf16>, vector<17x8xf32> -> vector<17x8xf32>
    %271 = vector.extract_strided_slice %211 {offsets = [0, 24], sizes = [17, 8], strides = [1, 1]} : vector<17x32xf32> to vector<17x8xf32>
    %272 = arith.truncf %271 : vector<17x8xf32> to vector<17x8xbf16>
    %273 = vector.extract_strided_slice %212 {offsets = [0, 24], sizes = [17, 8], strides = [1, 1]} : vector<17x32xf32> to vector<17x8xf32>
    %274 = arith.truncf %273 : vector<17x8xf32> to vector<17x8xbf16>
    %275 = vector.extract_strided_slice %213 {offsets = [0, 24], sizes = [17, 8], strides = [1, 1]} : vector<17x32xf32> to vector<17x8xf32>
    %276 = arith.truncf %275 : vector<17x8xf32> to vector<17x8xbf16>
    %cst_96 = arith.constant dense<0.000000e+00> : vector<17x17xf32>
    %277 = tpu.matmul %272, %274, %cst_96 {dimension_numbers = #tpu.dot_dimension_numbers<[1], [1], [0], [0], [0, 0, 1, 0], [], []>} : vector<17x8xbf16>, vector<17x8xbf16>, vector<17x17xf32> -> vector<17x17xf32>
    %cst_97 = arith.constant dense<0xFF800000> : vector<17xf32>
    %278 = vector.multi_reduction <maximumf>, %277, %cst_97 [1] : vector<17x17xf32> to vector<17xf32>
    %279 = vector.shape_cast %278 : vector<17xf32> to vector<17x1xf32>
    %280 = vector.broadcast %279 : vector<17x1xf32> to vector<17x17xf32>
    %281 = arith.subf %277, %280 : vector<17x17xf32>
    %282 = math.exp %281 : vector<17x17xf32>
    %cst_98 = arith.constant dense<0.000000e+00> : vector<17xf32>
    %283 = vector.multi_reduction <add>, %282, %cst_98 [1] : vector<17x17xf32> to vector<17xf32>
    %284 = vector.shape_cast %283 : vector<17xf32> to vector<17x1xf32>
    %285 = tpu.reciprocal %284 {approx = true} : vector<17x1xf32> -> vector<17x1xf32>
    %286 = vector.broadcast %285 : vector<17x1xf32> to vector<17x17xf32>
    %287 = arith.mulf %282, %286 : vector<17x17xf32>
    %288 = arith.truncf %287 : vector<17x17xf32> to vector<17x17xbf16>
    %cst_99 = arith.constant dense<0.000000e+00> : vector<17x8xf32>
    %289 = tpu.matmul %288, %276, %cst_99 {dimension_numbers = #tpu.dot_dimension_numbers<[1], [0], [0], [1], [0, 0, 1, 1], [], []>} : vector<17x17xbf16>, vector<17x8xbf16>, vector<17x8xf32> -> vector<17x8xf32>
    %290 = tpu.concatenate %232, %251, %270, %289 in 1 : vector<17x8xf32>, vector<17x8xf32>, vector<17x8xf32>, vector<17x8xf32> -> vector<17x32xf32>
    %291 = arith.truncf %290 : vector<17x32xf32> to vector<17x32xbf16>
    %c1_100 = arith.constant 1 : index
    %c0_101 = arith.constant 0 : index
    %c0_102 = arith.constant 0 : index
    %292 = vector.load %arg7[%c1_100, %c0_101, %c0_102] : memref<2x32x32xbf16, #tpu.memory_space<vmem>>, vector<1x32x32xbf16>
    %293 = vector.shape_cast %292 : vector<1x32x32xbf16> to vector<32x32xbf16>
    %cst_103 = arith.constant dense<0.000000e+00> : vector<17x32xf32>
    %294 = tpu.matmul %291, %293, %cst_103 {dimension_numbers = #tpu.dot_dimension_numbers<[1], [0], [0], [1], [0, 0, 1, 1], [], []>} : vector<17x32xbf16>, vector<32x32xbf16>, vector<17x32xf32> -> vector<17x32xf32>
    %c1_104 = arith.constant 1 : index
    %c1_105 = arith.constant 1 : index
    %c0_106 = arith.constant 0 : index
    %295 = vector.load %arg5[%c1_104, %c1_105, %c0_106] : memref<2x4x128xf32, #tpu.memory_space<vmem>>, vector<1x1x32xf32>
    %296 = vector.shape_cast %295 : vector<1x1x32xf32> to vector<1x32xf32>
    %297 = vector.broadcast %296 : vector<1x32xf32> to vector<17x32xf32>
    %298 = arith.addf %294, %297 : vector<17x32xf32>
    %299 = arith.addf %176, %298 : vector<17x32xf32>
    %cst_107 = arith.constant dense<0.000000e+00> : vector<17xf32>
    %300 = vector.multi_reduction <add>, %299, %cst_107 [1] : vector<17x32xf32> to vector<17xf32>
    %301 = vector.shape_cast %300 : vector<17xf32> to vector<17x1xf32>
    %cst_108 = arith.constant 3.200000e+01 : f32
    %302 = vector.broadcast %cst_108 : f32 to vector<17x1xf32>
    %303 = arith.divf %301, %302 : vector<17x1xf32>
    %304 = vector.broadcast %303 : vector<17x1xf32> to vector<17x32xf32>
    %305 = arith.subf %299, %304 : vector<17x32xf32>
    %306 = arith.mulf %305, %305 : vector<17x32xf32>
    %cst_109 = arith.constant dense<0.000000e+00> : vector<17xf32>
    %307 = vector.multi_reduction <add>, %306, %cst_109 [1] : vector<17x32xf32> to vector<17xf32>
    %308 = vector.shape_cast %307 : vector<17xf32> to vector<17x1xf32>
    %cst_110 = arith.constant 3.200000e+01 : f32
    %309 = vector.broadcast %cst_110 : f32 to vector<17x1xf32>
    %310 = arith.divf %308, %309 : vector<17x1xf32>
    %311 = vector.broadcast %303 : vector<17x1xf32> to vector<17x32xf32>
    %312 = arith.subf %299, %311 : vector<17x32xf32>
    %cst_111 = arith.constant 9.99999997E-7 : f32
    %313 = vector.broadcast %cst_111 : f32 to vector<17x1xf32>
    %314 = arith.addf %310, %313 : vector<17x1xf32>
    %315 = math.rsqrt %314 : vector<17x1xf32>
    %316 = vector.broadcast %315 : vector<17x1xf32> to vector<17x32xf32>
    %317 = arith.mulf %312, %316 : vector<17x32xf32>
    %318 = vector.broadcast %179 : vector<1x32xf32> to vector<17x32xf32>
    %319 = arith.mulf %317, %318 : vector<17x32xf32>
    %320 = vector.broadcast %180 : vector<1x32xf32> to vector<17x32xf32>
    %321 = arith.addf %319, %320 : vector<17x32xf32>
    %322 = arith.truncf %321 : vector<17x32xf32> to vector<17x32xbf16>
    %c1_112 = arith.constant 1 : index
    %c0_113 = arith.constant 0 : index
    %c0_114 = arith.constant 0 : index
    %323 = vector.load %arg8[%c1_112, %c0_113, %c0_114] : memref<2x32x128xbf16, #tpu.memory_space<vmem>>, vector<1x32x128xbf16>
    %324 = vector.shape_cast %323 : vector<1x32x128xbf16> to vector<32x128xbf16>
    %cst_115 = arith.constant dense<0.000000e+00> : vector<17x128xf32>
    %325 = tpu.matmul %322, %324, %cst_115 {dimension_numbers = #tpu.dot_dimension_numbers<[1], [0], [0], [1], [0, 0, 1, 1], [], []>} : vector<17x32xbf16>, vector<32x128xbf16>, vector<17x128xf32> -> vector<17x128xf32>
    %c1_116 = arith.constant 1 : index
    %c2_117 = arith.constant 2 : index
    %c0_118 = arith.constant 0 : index
    %326 = vector.load %arg5[%c1_116, %c2_117, %c0_118] : memref<2x4x128xf32, #tpu.memory_space<vmem>>, vector<1x1x128xf32>
    %327 = vector.shape_cast %326 : vector<1x1x128xf32> to vector<1x128xf32>
    %328 = vector.broadcast %327 : vector<1x128xf32> to vector<17x128xf32>
    %329 = arith.addf %325, %328 : vector<17x128xf32>
    %cst_119 = arith.constant 5.000000e-01 : f32
    %330 = vector.broadcast %cst_119 : f32 to vector<17x128xf32>
    %331 = arith.mulf %330, %329 : vector<17x128xf32>
    %cst_120 = arith.constant 0.707106769 : f32
    %332 = vector.broadcast %cst_120 : f32 to vector<17x128xf32>
    %333 = arith.mulf %329, %332 : vector<17x128xf32>
    %334 = math.erf %333 : vector<17x128xf32>
    %cst_121 = arith.constant 1.000000e+00 : f32
    %335 = vector.broadcast %cst_121 : f32 to vector<17x128xf32>
    %336 = arith.addf %335, %334 : vector<17x128xf32>
    %337 = arith.mulf %331, %336 : vector<17x128xf32>
    %338 = arith.truncf %337 : vector<17x128xf32> to vector<17x128xbf16>
    %c1_122 = arith.constant 1 : index
    %c0_123 = arith.constant 0 : index
    %c0_124 = arith.constant 0 : index
    %339 = vector.load %arg9[%c1_122, %c0_123, %c0_124] : memref<2x128x32xbf16, #tpu.memory_space<vmem>>, vector<1x128x32xbf16>
    %340 = vector.shape_cast %339 : vector<1x128x32xbf16> to vector<128x32xbf16>
    %cst_125 = arith.constant dense<0.000000e+00> : vector<17x32xf32>
    %341 = tpu.matmul %338, %340, %cst_125 {dimension_numbers = #tpu.dot_dimension_numbers<[1], [0], [0], [1], [0, 0, 1, 1], [], []>} : vector<17x128xbf16>, vector<128x32xbf16>, vector<17x32xf32> -> vector<17x32xf32>
    %c1_126 = arith.constant 1 : index
    %c3_127 = arith.constant 3 : index
    %c0_128 = arith.constant 0 : index
    %342 = vector.load %arg5[%c1_126, %c3_127, %c0_128] : memref<2x4x128xf32, #tpu.memory_space<vmem>>, vector<1x1x32xf32>
    %343 = vector.shape_cast %342 : vector<1x1x32xf32> to vector<1x32xf32>
    %344 = vector.broadcast %343 : vector<1x32xf32> to vector<17x32xf32>
    %345 = arith.addf %341, %344 : vector<17x32xf32>
    %346 = arith.addf %299, %345 : vector<17x32xf32>
    %c8 = arith.constant 8 : index
    %c0_129 = arith.constant 0 : index
    %347 = vector.load %arg4[%c8, %c0_129] : memref<10x32xf32, #tpu.memory_space<vmem>>, vector<1x32xf32>
    %c9 = arith.constant 9 : index
    %c0_130 = arith.constant 0 : index
    %348 = vector.load %arg4[%c9, %c0_130] : memref<10x32xf32, #tpu.memory_space<vmem>>, vector<1x32xf32>
    %cst_131 = arith.constant dense<0.000000e+00> : vector<17xf32>
    %349 = vector.multi_reduction <add>, %346, %cst_131 [1] : vector<17x32xf32> to vector<17xf32>
    %350 = vector.shape_cast %349 : vector<17xf32> to vector<17x1xf32>
    %cst_132 = arith.constant 3.200000e+01 : f32
    %351 = vector.broadcast %cst_132 : f32 to vector<17x1xf32>
    %352 = arith.divf %350, %351 : vector<17x1xf32>
    %353 = vector.broadcast %352 : vector<17x1xf32> to vector<17x32xf32>
    %354 = arith.subf %346, %353 : vector<17x32xf32>
    %355 = arith.mulf %354, %354 : vector<17x32xf32>
    %cst_133 = arith.constant dense<0.000000e+00> : vector<17xf32>
    %356 = vector.multi_reduction <add>, %355, %cst_133 [1] : vector<17x32xf32> to vector<17xf32>
    %357 = vector.shape_cast %356 : vector<17xf32> to vector<17x1xf32>
    %cst_134 = arith.constant 3.200000e+01 : f32
    %358 = vector.broadcast %cst_134 : f32 to vector<17x1xf32>
    %359 = arith.divf %357, %358 : vector<17x1xf32>
    %360 = vector.broadcast %352 : vector<17x1xf32> to vector<17x32xf32>
    %361 = arith.subf %346, %360 : vector<17x32xf32>
    %cst_135 = arith.constant 9.99999997E-7 : f32
    %362 = vector.broadcast %cst_135 : f32 to vector<17x1xf32>
    %363 = arith.addf %359, %362 : vector<17x1xf32>
    %364 = math.rsqrt %363 : vector<17x1xf32>
    %365 = vector.broadcast %364 : vector<17x1xf32> to vector<17x32xf32>
    %366 = arith.mulf %361, %365 : vector<17x32xf32>
    %367 = vector.broadcast %347 : vector<1x32xf32> to vector<17x32xf32>
    %368 = arith.mulf %366, %367 : vector<17x32xf32>
    %369 = vector.broadcast %348 : vector<1x32xf32> to vector<17x32xf32>
    %370 = arith.addf %368, %369 : vector<17x32xf32>
    %371 = vector.extract_strided_slice %370 {offsets = [0, 0], sizes = [16, 32], strides = [1, 1]} : vector<17x32xf32> to vector<16x32xf32>
    %c0_136 = arith.constant 0 : index
    %c0_137 = arith.constant 0 : index
    %c0_138 = arith.constant 0 : index
    %372 = vector.load %arg10[%c0_136, %c0_137, %c0_138] : memref<1x16x32xf32, #tpu.memory_space<vmem>>, vector<1x16x32xf32>
    %373 = vector.shape_cast %372 : vector<1x16x32xf32> to vector<16x32xf32>
    %374 = vector.shape_cast %371 : vector<16x32xf32> to vector<1x16x32xf32>
    tpu.vector_store %arg10[%c0_136, %c0_137, %c0_138], %374 {strides = array<i32>} : memref<1x16x32xf32, #tpu.memory_space<vmem>>, vector<1x16x32xf32>,
    return
  }
  func.func @transform_0(%arg0: i32) -> (i32, i32, i32) {
    %c0_i32 = arith.constant 0 : i32
    %c0_i32_0 = arith.constant 0 : i32
    %c0_i32_1 = arith.constant 0 : i32
    return %arg0, %c0_i32, %c0_i32_0 : i32, i32, i32
  }
  func.func @transform_1(%arg0: i32) -> (i32, i32) {
    %c0_i32 = arith.constant 0 : i32
    %c0_i32_0 = arith.constant 0 : i32
    %c0_i32_1 = arith.constant 0 : i32
    return %c0_i32, %c0_i32_0 : i32, i32
  }
  func.func @transform_2(%arg0: i32) -> (i32, i32) {
    %c0_i32 = arith.constant 0 : i32
    %c0_i32_0 = arith.constant 0 : i32
    %c0_i32_1 = arith.constant 0 : i32
    return %c0_i32, %c0_i32_0 : i32, i32
  }
  func.func @transform_3(%arg0: i32) -> (i32, i32) {
    %c0_i32 = arith.constant 0 : i32
    %c0_i32_0 = arith.constant 0 : i32
    %c0_i32_1 = arith.constant 0 : i32
    return %c0_i32, %c0_i32_0 : i32, i32
  }
  func.func @transform_4(%arg0: i32) -> (i32, i32, i32) {
    %c0_i32 = arith.constant 0 : i32
    %c0_i32_0 = arith.constant 0 : i32
    %c0_i32_1 = arith.constant 0 : i32
    %c0_i32_2 = arith.constant 0 : i32
    return %c0_i32, %c0_i32_0, %c0_i32_1 : i32, i32, i32
  }
  func.func @transform_5(%arg0: i32) -> (i32, i32, i32) {
    %c0_i32 = arith.constant 0 : i32
    %c0_i32_0 = arith.constant 0 : i32
    %c0_i32_1 = arith.constant 0 : i32
    %c0_i32_2 = arith.constant 0 : i32
    return %c0_i32, %c0_i32_0, %c0_i32_1 : i32, i32, i32
  }
  func.func @transform_6(%arg0: i32) -> (i32, i32, i32) {
    %c0_i32 = arith.constant 0 : i32
    %c0_i32_0 = arith.constant 0 : i32
    %c0_i32_1 = arith.constant 0 : i32
    %c0_i32_2 = arith.constant 0 : i32
    return %c0_i32, %c0_i32_0, %c0_i32_1 : i32, i32, i32
  }
  func.func @transform_7(%arg0: i32) -> (i32, i32, i32) {
    %c0_i32 = arith.constant 0 : i32
    %c0_i32_0 = arith.constant 0 : i32
    %c0_i32_1 = arith.constant 0 : i32
    %c0_i32_2 = arith.constant 0 : i32
    return %c0_i32, %c0_i32_0, %c0_i32_1 : i32, i32, i32
  }
  func.func @transform_8(%arg0: i32) -> (i32, i32, i32) {
    %c0_i32 = arith.constant 0 : i32
    %c0_i32_0 = arith.constant 0 : i32
    %c0_i32_1 = arith.constant 0 : i32
    %c0_i32_2 = arith.constant 0 : i32
    return %c0_i32, %c0_i32_0, %c0_i32_1 : i32, i32, i32
  }
  func.func @transform_9(%arg0: i32) -> (i32, i32, i32) {
    %c0_i32 = arith.constant 0 : i32
    %c0_i32_0 = arith.constant 0 : i32
    %c0_i32_1 = arith.constant 0 : i32
    return %arg0, %c0_i32, %c0_i32_0 : i32, i32, i32
  }
}

</mosaic_0001>

<bundles_post_ra>
// kernel: image_encoder_forward.1
= control target key start
LH: loop header
LB: loop body
LE: loop exit
PB: predicated region body
PF: predicated region fallthrough
CT: control target
= control target key end

     0   :  { %s4456_s0 = inlined_call_operand.vmem [shape: f32[2,17,48], index: 0, kind: input, shape index: {}]   ;;  %s4457_s1 = inlined_call_operand.vmem [shape: f32[17,32], index: 1, kind: input, shape index: {}]   ;;  %s4458_s2 = inlined_call_operand.vmem [shape: bf16[48,32], index: 2, kind: input, shape index: {}]   ;;  %s4459_s3 = inlined_call_operand.vmem [shape: f32[10,32], index: 3, kind: input, shape index: {}]   ;;  %s4460_s4 = inlined_call_operand.vmem [shape: f32[2,4,128], index: 4, kind: input, shape index: {}]   ;;  %s4461_s5 = inlined_call_operand.vmem [shape: bf16[2,32,96], index: 5, kind: input, shape index: {}]   ;;  %s4462_s6 = inlined_call_operand.vmem [shape: bf16[2,32,32], index: 6, kind: input, shape index: {}]   ;;  %s4463_s7 = inlined_call_operand.vmem [shape: bf16[2,32,128], index: 7, kind: input, shape index: {}]   ;;  %s4464_s8 = inlined_call_operand.vmem [shape: bf16[2,128,32], index: 8, kind: input, shape index: {}]   ;;  %s4465_s9 = inlined_call_operand.hbm [shape: f32[2,16,32], index: 9, kind: output, shape index: {}]  }
   0x1   :  { %4486 = sst [smem:[#allocation5_spill]] %s4456_s0 }
   0x2   :  { %14 = vsyncpa [#allocation3], 0 }
   0x3   :  { %16 = vsyncpa [#allocation3 + $0x1], 0  ;;  %s3801_s30 = smov 0   ;;  %s3803_s10 = smov 0  }
   0x4   :  { %s3805_s11 = smov 0   ;;  %s3807_s12 = smov 0  }
   0x5 LB: > { %s3822_s13 = sadd.s32 4294967295, %s3732_s12   ;;  %s2923_s14 = sadd.s32 4294967294, %s3732_s12   ;;  %s3732_s12 = sphi %s3807_s12, %s4503_s12   ;;  %s3728_s11 = sphi %s3805_s11, %s4502_s11   ;;  %s3724_s10 = sphi %s3803_s10, %s4501_s10   ;;  %s3720_s30 = sphi %s3801_s30, %s4500_s30  }
   0x6   : > { %s3826_s15 = sadd.s32 1, %s3732_s12   ;;  %s223_s16 = sadd.s32 1, %s3728_s11 }
   0x7   : > { %s220_s17 = ssub.s32 %s3732_s12, %s3826_s15  ;;  %p233_p0 = scmp.ne.s32.totalorder %s3728_s11, %s3724_s10 }
   0x8   : > { %p221_p1 = scmp.eq.s32.totalorder %s220_s17, 0  ;;  %p234_p2 = scmp.eq.s32.totalorder %s3822_s13, 1 }
   0x9   : > { %p239_p3 = scmp.ne.s32.totalorder %s3724_s10, %s3720_s30  ;;  %p240_p4 = scmp.eq.s32.totalorder %s2923_s14, 1 }
   0xa   : > { %s3837_s18 = scalar_select %p221_p1, %s3728_s11, %s223_s16  }
   0xb   : > { %p3839_p5 = por %p234_p2, %p233_p0  ;;  %p3843_p6 = por %p240_p4, %p239_p3 }
   0xc   : > { %p2926_p7 = scmp.ge.s32.totalorder %s3732_s12, 1  ;;  %p290_p8 = scmp.lt.s32.totalorder %s3732_s12, 3 }
   0xe   : > { %p291_p9 = pnand %p2926_p7, %p290_p8 }
   0xf   : > { %v3503_v0 = vld [vmem:[%s4458_s2] sm:$0xff] (!%p291_p9)   ;;  %p326_p10 = scmp.lt.s32.totalorder (!%p291_p9), %s3822_s13, 1  ;;  %v3504_v1 = vld [vmem:[%s4458_s2 + $0x8] sm:$0xff] (!%p291_p9)   ;;  %v3505_v2 = vld [vmem:[%s4458_s2 + $0x10] sm:$0xff] (!%p291_p9)   ;;  %s4489_s0 = sld [smem:[#allocation5_spill]] (!%p291_p9)  ;;  %vm364_vm0 = vcmask (!%p291_p9), 392192  }
  0x10   : > { %294 = sbr.rel (%p291_p9) target bundleno = 8480 (0x2120), region = 56  ;;  %3175 = vmatprep.subr.bf16.mxu1 (!%p291_p9), %v3503_v0  ;;  %v345_v8 = vld [vmem:[%s4457_s1 + $0x10] sm:$0x1] (!%p291_p9)  ;;  %v343_v9 = vld [vmem:[%s4457_s1] sm:$0xff] (!%p291_p9)  ;;  %vm430_vm1 = vcmask (!%p291_p9), 253952   ;;  %v344_v13 = vld [vmem:[%s4457_s1 + $0x8] sm:$0xff] (!%p291_p9) }
  0x11   : > { %3176 = vmatpush3.bf16.msra.mxu1 (!%p291_p9), %v3503_v0  ;;  %vm423_vm2 = vcmask (!%p291_p9), 261120   ;;  %v3506_v36 = vld [vmem:[%s4461_s5] sm:$0xff] (!%p291_p9)   ;;  %v3507_v37 = vld [vmem:[%s4461_s5 + $0x8] sm:$0xff] (!%p291_p9)   ;;  %s3734_s24 = smov (!%p291_p9), 96   ;;  %vm564_vm3 = vcmask (!%p291_p9), 64512   ;;  %vm625_vm4 = vcmask (!%p291_p9), 138240  }
  0x12   : > { %3177 = vmatprep.subr.bf16.mxu1 (!%p291_p9), %v3504_v1  ;;  %v2934_v49 = vld [vmem:[%s4459_s3] ss:$0 sm:$0xff] (!%p291_p9)  ;;  %v2935_v55 = vld [vmem:[%s4459_s3 + $0x1] ss:$0 sm:$0xff] (!%p291_p9)  ;;  %vm632_vm5 = vcmask (!%p291_p9), 131072   ;;  %s3736_s26 = smov (!%p291_p9), 120  }
  0x13   : > { %v2936_v63 = vld [vmem:[%s4460_s4] ss:$0 sm:$0xff] (!%p291_p9)  ;;  %s3737_s27 = smov (!%p291_p9), 88   ;;  %vm673_vm6 = vcmask (!%p291_p9), 1040384   ;;  %s4482_s29 = smov (!%p291_p9), 80   ;;  %vm1261_vm7 = vcmask (!%p291_p9), 130048  }
  0x14   : > { %s4480_s14 = smov (!%p291_p9), 112   ;;  %s4474_s17 = smov (!%p291_p9), 72   ;;  %vm1265_vm8 = vcmask (!%p291_p9), 195584  }
  0x15   : > { %3178 = vmatpush3.bf16.msra.mxu1 (!%p291_p9), %v3504_v1  ;;  %s4466_s21 = smov (!%p291_p9), 104   ;;  %s4472_s22 = smov (!%p291_p9), 40  }
  0x16   : > { %3179 = vmatprep.subr.bf16.mxu1 (!%p291_p9), %v3505_v2  ;;  %s4470_s23 = smov (!%p291_p9), 8  }
  0x17   : > { %s327_s25 = scalar_select %p326_p10, %s3822_s13, 1 }
  0x19   : > { %s3417_s28 = smul.u32 24, %s327_s25  ;;  %3180 = vmatpush3.bf16.msra.mxu1 %v3505_v2  ;;  %s3735_s25 = smov 64  }
  0x1a   : > { %3185 = vmatprep.subr.bf16.mxu1 %v3506_v36 }
  0x1b   : > { %s330_s16 = scalar_lea.vmem %s4489_s0, %s3417_s28  ;;  %s4484_s28 = smov 56  }
  0x1c   : > { %v332_v3 = vld [vmem:[%s330_s16] sm:$0xff]  ;;  %v333_v4 = vld [vmem:[%s330_s16 + $0x8] sm:$0xff]  ;;  %v334_v5 = vld [vmem:[%s330_s16 + $0x10] sm:$0x1]  ;;  %s4476_s16 = smov 48  }
  0x1d   : > { %v335_v6 = vpack.c.bf16 %v333_v4, %v332_v3  ;;  %v336_v7 = vpack.c.bf16 %v334_v5, %v334_v5 }
  0x1f   : > { %3181 = vmatprep.mubr.msk.bf16.mxu1 %vm364_vm0, %v335_v6 }
  0x20   : > { %3182 = vmatmul.mubr.msk.bf16.vlgmr.msra.gmra.mrb[0].mxu1 %vm364_vm0, %v336_v7 }
  0x21   : > { %3186 = vmatpush3.bf16.msra.mxu1 %v3506_v36 }
  0x22   : > { %3187 = vmatprep.subr.bf16.mxu1 %v3507_v37 }
  0x25   : > { %3188 = vmatpush3.bf16.msra.mxu1 %v3507_v37 }
  0xf3   : > { %v3183_v10 = vpop.f32.mrb[0].mxu1 }
  0xf4   : > { %v3869_v11 = vadd.f32 %v3183_v10, %v345_v8  ;;  %v405_v12 = vpop.f32.mrb[1].mxu1 }
  0xf5   : > { %v3874_v14 = vadd.f32 %v405_v12, %v343_v9  ;;  %v3184_v15 = vpop.f32.mrb[2].mxu1 }
  0xf6   : > { %v408_v16 = vpop.f32.mrb[3].mxu1  ;;  %v431_v17 = vsel %vm430_vm1, %v3869_v11, 0.0 }
  0xf7   : > { %v3878_v18 = vadd.f32 %v408_v16, %v344_v13  ;;  %432 = vadd.xlane.f32.xlu1 %v431_v17  ;;  %v424_v19 = vsel %vm423_vm2, %v3874_v14, 0.0 }
  0xf8   : > { %425 = vadd.xlane.f32.xlu0 %v424_v19 }
  0xf9   : > { %v427_v20 = vsel %vm423_vm2, %v3878_v18, 0.0 }
  0xfc   : > { %428 = vadd.xlane.f32.xlu0 %v427_v20 }
 0x184   : > { %v433_v21 = vpop.xlane.xlu1 %432 }
 0x185   : > { %v437_v22 = vmul.f32 0.03125, %v433_v21  ;;  %v426_v23 = vpop.xlane.xlu0 %425 }
 0x186   : > { %v435_v24 = vmul.f32 0.03125, %v426_v23 }
 0x187   : > { %v440_v25 = vsub.f32 %v3869_v11, %v437_v22 }
 0x188   : > { %v438_v26 = vsub.f32 %v3874_v14, %v435_v24 }
 0x189   : > { %v429_v27 = vpop.xlane.xlu0 %428  ;;  %v443_v32 = vmul.f32 %v440_v25, %v440_v25 }
 0x18a   : > { %v436_v28 = vmul.f32 0.03125, %v429_v27  ;;  %v441_v29 = vmul.f32 %v438_v26, %v438_v26 }
 0x18b   : > { %v450_v34 = vsel %vm430_vm1, %v443_v32, 0.0 }
 0x18c   : > { %v439_v30 = vsub.f32 %v3878_v18, %v436_v28  ;;  %v444_v31 = vsel %vm423_vm2, %v441_v29, 0.0 }
 0x18d   : > { %445 = vadd.xlane.f32.xlu1 %v444_v31 }
 0x18e   : > { %v442_v33 = vmul.f32 %v439_v30, %v439_v30 }
 0x190   : > { %v447_v35 = vsel %vm423_vm2, %v442_v33, 0.0 }
 0x191   : > { %451 = vadd.xlane.f32.xlu1 %v450_v34  ;;  %448 = vadd.xlane.f32.xlu0 %v447_v35 }
 0x21a   : > { %v446_v38 = vpop.xlane.xlu1 %445 }
 0x21b   : > { %v453_v39 = vmul.f32 0.03125, %v446_v38 }
 0x21d   : > { %v456_v40 = vadd.f32 1e-06, %v453_v39 }
 0x21e   : > { %v452_v41 = vpop.xlane.xlu1 %451  ;;  %v449_v42 = vpop.xlane.xlu0 %448 }
 0x21f   : > { %3534 = vrsqrt.f32 %v456_v40  ;;  %v455_v43 = vmul.f32 0.03125, %v452_v41  ;;  %v454_v44 = vmul.f32 0.03125, %v449_v42  ;;  %v3738_v42 = vmov 0  }
 0x221   : > { %v458_v45 = vadd.f32 1e-06, %v455_v43  ;;  %v457_v46 = vadd.f32 1e-06, %v454_v44  ;;  %v3941_v43 = vsel %vm673_vm6, 65535, %v3738_v42 }
 0x223   : > { %3536 = vrsqrt.f32 %v458_v45 }
 0x224   : > { %3538 = vrsqrt.f32 %v457_v46 }
 0x229   : > { %v3535_v47 = vpop.eup %3534 }
 0x22a   : > { %v462_v48 = vmul.f32 %v3535_v47, %v438_v26 }
 0x22c   : > { %v469_v54 = vmul.f32 %v2934_v49, %v462_v48 }
 0x22d   : > { %v3537_v50 = vpop.eup %3536 }
 0x22e   : > { %v3539_v51 = vpop.eup %3538  ;;  %v464_v52 = vmul.f32 %v3537_v50, %v440_v25  ;;  %v476_v59 = vadd.f32 %v2935_v55, %v469_v54 }
 0x22f   : > { %v463_v53 = vmul.f32 %v3539_v51, %v439_v30 }
 0x230   : > { %v471_v56 = vmul.f32 %v2934_v49, %v464_v52 }
 0x231   : > { %v470_v57 = vmul.f32 %v2934_v49, %v463_v53 }
 0x232   : > { %v478_v58 = vadd.f32 %v2935_v55, %v471_v56 }
 0x233   : > { %v477_v60 = vadd.f32 %v2935_v55, %v470_v57 }
 0x234   : > { %v480_v61 = vpack.c.bf16 %v478_v58, %v478_v58 }
 0x235   : > { %v479_v62 = vpack.c.bf16 %v477_v60, %v476_v59 }
 0x237   : > { %3189 = vmatprep.mubr.msk.bf16.mxu1 %vm423_vm2, %v479_v62 }
 0x238   : > { %3190 = vmatmul.mubr.msk.bf16.vlgmr.msra.gmra.mrb[4].mxu1 %vm423_vm2, %v480_v61 }
 0x30b   : > { %v3191_v0 = vpop.f32.mrb[4].mxu1 }
 0x30c   : > { %v551_v1 = vadd.f32 %v3191_v0, %v2936_v63  ;;  %v542_v2 = vpop.f32.mrb[5].mxu1 }
 0x30d   : > { %v3192_v3 = vpop.f32.mrb[6].mxu1  ;;  %v543_v6 = vadd.f32 %v2936_v63, %v542_v2 }
 0x30e   : > { %v3907_v4 = vpack.c.bf16 %v551_v1, %v551_v1  ;;  %v545_v5 = vpop.f32.mrb[7].mxu1 }
 0x30f   : > { %v546_v7 = vadd.f32 %v2936_v63, %v545_v5 }
 0x310   : > { %562 = vrot.lane.b32.xlu1 %v3907_v4, %s3734_s24 }
 0x311   : > { %v3911_v8 = vpack.c.bf16 %v546_v7, %v543_v6 }
 0x313   : > { %560 = vrot.lane.b32.xlu0 %v3911_v8, %s3734_s24  ;;  %3197 = vmatprep.mubr.msk.bf16.mxu1 %vm564_vm3, %v3911_v8 }
 0x382   : > { %v563_v12 = vpop.permute.xlu1 %562 }
 0x383   : > { %v575_v13 = vsel %vm564_vm3, %v563_v12, 0 }
 0x385   : > { %v561_v9 = vpop.permute.xlu0 %560 }
 0x386   : > { %3401 = vmatprep.subr.msk.bf16.mxu1 %vm564_vm3, %v561_v9  ;;  %v572_v10 = vsel %vm564_vm3, %v561_v9, 0 }
 0x387   : > { %3194 = vmatpush3.bf16.xpose.msra.mxu1 %v572_v10 }
 0x388   : > { %3402 = vmatprep.subr.msk.bf16.mxu1 %vm564_vm3, %v563_v12 }
 0x38f   : > { %3196 = vmatpush3.bf16.xpose.msra.mxu1 %v575_v13 }
 0x396   : > { %3198 = vmatmul.mubr.msk.bf16.vlgmr.msra.gmra.mrb[8].mxu1 %vm564_vm3, %v3907_v4 }
 0x469   : > { %v3199_v15 = vpop.f32.mrb[8].mxu1 }
 0x46a   : > { %v611_v16 = vpop.f32.mrb[9].mxu1  ;;  %v633_v22 = vsel %vm632_vm5, %v3199_v15, -inf }
 0x46b   : > { %v3200_v17 = vpop.f32.mrb[10].mxu1  ;;  %v626_v19 = vsel %vm625_vm4, %v611_v16, -inf }
 0x46c   : > { %627 = vmax.xlane.f32.xlu1 %v626_v19  ;;  %v614_v20 = vpop.f32.mrb[11].mxu1 }
 0x46d   : > { %v629_v21 = vsel %vm625_vm4, %v614_v20, -inf }
 0x46e   : > { %630 = vmax.xlane.f32.xlu0 %v629_v21 }
 0x472   : > { %634 = vmax.xlane.f32.xlu0 %v633_v22 }
 0x4f9   : > { %v628_v23 = vpop.xlane.xlu1 %627 }
 0x4fa   : > { %v636_v26 = vsub.f32 %v611_v16, %v628_v23 }
 0x4fb   : > { %v631_v24 = vpop.xlane.xlu0 %630 }
 0x4fc   : > { %v637_v25 = vsub.f32 %v614_v20, %v631_v24  ;;  %v639_v30 = vmul.f32 1.442695, %v636_v26 }
 0x4fe   : > { %v641_v27 = vmul.f32 1.442695, %v637_v25 }
 0x4ff   : > { %v635_v28 = vpop.xlane.xlu0 %634 }
 0x500   : > { %3540 = vpow2.f32 %v641_v27  ;;  %v638_v29 = vsub.f32 %v3199_v15, %v635_v28 }
 0x502   : > { %v643_v31 = vmul.f32 1.442695, %v638_v29 }
 0x504   : > { %3542 = vpow2.f32 %v643_v31 }
 0x505   : > { %3544 = vpow2.f32 %v639_v30 }
 0x50a   : > { %v3541_v32 = vpop.eup %3540 }
 0x50b   : > { %v648_v33 = vsel %vm625_vm4, %v3541_v32, 0.0 }
 0x50c   : > { %649 = vadd.xlane.f32.xlu0 %v648_v33 }
 0x50e   : > { %v3543_v34 = vpop.eup %3542 }
 0x50f   : > { %v651_v35 = vsel %vm632_vm5, %v3543_v34, 0.0  ;;  %v3545_v36 = vpop.eup %3544 }
 0x510   : > { %652 = vadd.xlane.f32.xlu1 %v651_v35  ;;  %v645_v37 = vsel %vm625_vm4, %v3545_v36, 0.0 }
 0x514   : > { %646 = vadd.xlane.f32.xlu1 %v645_v37 }
 0x522   : > { %662 = vrot.lane.b32.xlu0 %v3911_v8, %s3735_s25 }
 0x525   : > { %664 = vrot.lane.b32.xlu1 %v3907_v4, %s3735_s25 }
 0x526   : > { %727 = vrot.lane.b32.xlu0 %v3911_v8, %s3736_s26 }
 0x529   : > { %731 = vrot.lane.b32.xlu1 %v3911_v8, %s3737_s27 }
 0x52d   : > { %733 = vrot.lane.b32.xlu1 %v3907_v4, %s3737_s27 }
 0x531   : > { %729 = vrot.lane.b32.xlu1 %v3907_v4, %s3736_s26 }
 0x599   : > { %v650_v38 = vpop.xlane.xlu0 %649 }
 0x59d   : > { %v653_v39 = vpop.xlane.xlu1 %652  ;;  %v663_v40 = vpop.permute.xlu0 %662 }
 0x59e   : > { %3201 = vmatprep.subr.bf16.mxu0 %v663_v40  ;;  %3546 = vrcp.f32 %v653_v39 }
 0x59f   : > { %3202 = vmatpush3.bf16.msra.mxu0 %v663_v40  ;;  %3548 = vrcp.f32 %v650_v38 }
 0x5a1   : > { %v647_v41 = vpop.xlane.xlu1 %646  ;;  %v728_v55 = vpop.permute.xlu0 %727 }
 0x5a2   : > { %3550 = vrcp.f32 %v647_v41 }
 0x5a5   : > { %v665_v44 = vpop.permute.xlu1 %664 }
 0x5a6   : > { %v677_v45 = vand.u32 %v3941_v43, %v665_v44 }
 0x5a8   : > { %3203 = vmatprep.subr.bf16.mxu0 %v677_v45  ;;  %v3547_v46 = vpop.eup %3546 }
 0x5a9   : > { %v732_v47 = vpop.permute.xlu1 %731  ;;  %3204 = vmatpush3.bf16.msra.mxu0 %v677_v45  ;;  %v3549_v48 = vpop.eup %3548  ;;  %v659_v50 = vmul.f32 %v3547_v46, %v3543_v34 }
 0x5aa   : > { %3403 = vmatprep.subr.msk.bf16.mxu0 %vm564_vm3, %v732_v47  ;;  %v658_v52 = vmul.f32 %v3549_v48, %v3541_v32  ;;  %v742_v56 = vsel %vm564_vm3, %v732_v47, 0 }
 0x5ab   : > { %v661_v54 = vpack.c.bf16 %v659_v50, %v659_v50 }
 0x5ac   : > { %v3551_v49 = vpop.eup %3550 }
 0x5ad   : > { %v657_v51 = vmul.f32 %v3551_v49, %v3545_v36  ;;  %v734_v57 = vpop.permute.xlu1 %733 }
 0x5ae   : > { %v745_v58 = vsel %vm564_vm3, %v734_v57, 0 }
 0x5af   : > { %v660_v53 = vpack.c.bf16 %v658_v52, %v657_v51 }
 0x5b1   : > { %3205 = vmatprep.mubr.msk.bf16.mxu0 %vm625_vm4, %v660_v53  ;;  %v730_v59 = vpop.permute.xlu1 %729 }
 0x5b2   : > { %3206 = vmatmul.mubr.msk.bf16.vlgmr.msra.gmra.mrb[0].mxu0 %vm625_vm4, %v661_v54 }
 0x5b3   : > { %3210 = vmatpush3.bf16.xpose.msra.mxu0 %v742_v56  ;;  %3213 = vmatprep.mubr.msk.bf16.mxu0 %vm564_vm3, %v728_v55 }
 0x5b4   : > { %3404 = vmatprep.subr.msk.bf16.mxu0 %vm564_vm3, %v734_v57 }
 0x5bb   : > { %3212 = vmatpush3.bf16.xpose.msra.mxu0 %v745_v58 }
 0x5c2   : > { %3214 = vmatmul.mubr.msk.bf16.vlgmr.msra.gmra.mrb[4].mxu0 %vm564_vm3, %v730_v59 }
 0x685   : > { %v3952_v60 = vpop.f32.mrb[0].mxu0 }
 0x686   : > { %v3954_v61 = vpop.f32.mrb[1].mxu0 }
 0x687   : > { %v3208_v62 = vpop.f32.mrb[2].mxu0 }
 0x688   : > { %v3956_v63 = vpop.f32.mrb[3].mxu0 }
 0x695   : > { %v3215_v0 = vpop.f32.mrb[4].mxu0 }
 0x696   : > { %v781_v1 = vpop.f32.mrb[5].mxu0  ;;  %v801_v7 = vsel %vm632_vm5, %v3215_v0, -inf }
 0x697   : > { %v3216_v2 = vpop.f32.mrb[6].mxu0  ;;  %v795_v3 = vsel %vm625_vm4, %v781_v1, -inf }
 0x698   : > { %796 = vmax.xlane.f32.xlu0 %v795_v3  ;;  %v784_v5 = vpop.f32.mrb[7].mxu0 }
 0x699   : > { %v798_v6 = vsel %vm625_vm4, %v784_v5, -inf }
 0x69a   : > { %799 = vmax.xlane.f32.xlu1 %v798_v6 }
 0x69c   : > { %802 = vmax.xlane.f32.xlu0 %v801_v7 }
 0x725   : > { %v797_v9 = vpop.xlane.xlu0 %796 }
 0x726   : > { %v804_v10 = vsub.f32 %v781_v1, %v797_v9 }
 0x727   : > { %v800_v12 = vpop.xlane.xlu1 %799 }
 0x728   : > { %v807_v13 = vmul.f32 1.442695, %v804_v10  ;;  %v805_v15 = vsub.f32 %v784_v5, %v800_v12 }
 0x729   : > { %v803_v16 = vpop.xlane.xlu0 %802 }
 0x72a   : > { %3552 = vpow2.f32 %v807_v13  ;;  %v809_v17 = vmul.f32 1.442695, %v805_v15  ;;  %v806_v19 = vsub.f32 %v3215_v0, %v803_v16 }
 0x72c   : > { %3554 = vpow2.f32 %v809_v17  ;;  %v811_v20 = vmul.f32 1.442695, %v806_v19 }
 0x72e   : > { %3556 = vpow2.f32 %v811_v20 }
 0x734   : > { %v3553_v21 = vpop.eup %3552 }
 0x735   : > { %v813_v22 = vsel %vm625_vm4, %v3553_v21, 0.0 }
 0x736   : > { %v3555_v23 = vpop.eup %3554  ;;  %814 = vadd.xlane.f32.xlu0 %v813_v22 }
 0x737   : > { %v816_v26 = vsel %vm625_vm4, %v3555_v23, 0.0 }
 0x738   : > { %v3557_v24 = vpop.eup %3556 }
 0x739   : > { %v819_v25 = vsel %vm632_vm5, %v3557_v24, 0.0 }
 0x73a   : > { %820 = vadd.xlane.f32.xlu1 %v819_v25  ;;  %817 = vadd.xlane.f32.xlu0 %v816_v26 }
 0x74b   : > { %832 = vrot.lane.b32.xlu1 %v3907_v4, %s4484_s28 }
 0x74f   : > { %896 = vrot.lane.b32.xlu1 %v3911_v8, %s4482_s29 }
 0x750   : > { %830 = vrot.lane.b32.xlu0 %v3911_v8, %s4484_s28  ;;  %s4496_s28 = smov 40  }
 0x753   : > { %898 = vrot.lane.b32.xlu1 %v3907_v4, %s4482_s29  ;;  %s4497_s29 = smov 8  }
 0x754   : > { %892 = vrot.lane.b32.xlu0 %v3911_v8, %s4480_s14 }
 0x757   : > { %894 = vrot.lane.b32.xlu1 %v3907_v4, %s4480_s14  ;;  %s4498_s14 = smov 16  }
 0x7c3   : > { %v815_v27 = vpop.xlane.xlu0 %814 }
 0x7c4   : > { %3558 = vrcp.f32 %v815_v27 }
 0x7c7   : > { %v818_v28 = vpop.xlane.xlu0 %817  ;;  %v821_v29 = vpop.xlane.xlu1 %820 }
 0x7c8   : > { %3560 = vrcp.f32 %v818_v28 }
 0x7c9   : > { %3562 = vrcp.f32 %v821_v29 }
 0x7cb   : > { %v831_v30 = vpop.permute.xlu0 %830  ;;  %v833_v31 = vpop.permute.xlu1 %832 }
 0x7cc   : > { %v842_v32 = vand.u32 %v833_v31, %v3941_v43  ;;  %3217 = vmatprep.subr.bf16.mxu1 %v831_v30 }
 0x7cd   : > { %3218 = vmatpush3.bf16.msra.mxu1 %v831_v30 }
 0x7ce   : > { %3219 = vmatprep.subr.bf16.mxu1 %v842_v32  ;;  %v3559_v33 = vpop.eup %3558 }
 0x7cf   : > { %v897_v34 = vpop.permute.xlu1 %896  ;;  %v825_v37 = vmul.f32 %v3559_v33, %v3553_v21  ;;  %v893_v42 = vpop.permute.xlu0 %892 }
 0x7d0   : > { %v907_v44 = vsel %vm564_vm3, %v897_v34, 0 }
 0x7d1   : > { %3220 = vmatpush3.bf16.msra.mxu1 %v842_v32 }
 0x7d2   : > { %v3561_v35 = vpop.eup %3560  ;;  %3405 = vmatprep.subr.msk.bf16.mxu1 %vm564_vm3, %v897_v34 }
 0x7d3   : > { %v3563_v36 = vpop.eup %3562  ;;  %v826_v38 = vmul.f32 %v3561_v35, %v3555_v23  ;;  %v899_v45 = vpop.permute.xlu1 %898 }
 0x7d4   : > { %v827_v39 = vmul.f32 %v3563_v36, %v3557_v24  ;;  %v910_v46 = vsel %vm564_vm3, %v899_v45, 0 }
 0x7d5   : > { %v828_v40 = vpack.c.bf16 %v826_v38, %v825_v37 }
 0x7d6   : > { %v829_v41 = vpack.c.bf16 %v827_v39, %v827_v39 }
 0x7d7   : > { %3221 = vmatprep.mubr.msk.bf16.mxu1 %vm625_vm4, %v828_v40  ;;  %v895_v47 = vpop.permute.xlu1 %894 }
 0x7d8   : > { %3222 = vmatmul.mubr.msk.bf16.vlgmr.msra.gmra.mrb[12].mxu1 %vm625_vm4, %v829_v41 }
 0x7d9   : > { %3229 = vmatprep.mubr.msk.bf16.mxu1 %vm564_vm3, %v893_v42 }
 0x7da   : > { %3226 = vmatpush3.bf16.xpose.msra.mxu1 %v907_v44 }
 0x7db   : > { %3406 = vmatprep.subr.msk.bf16.mxu1 %vm564_vm3, %v899_v45 }
 0x7e2   : > { %3228 = vmatpush3.bf16.xpose.msra.mxu1 %v910_v46 }
 0x7e9   : > { %3230 = vmatmul.mubr.msk.bf16.vlgmr.msra.gmra.mrb[16].mxu1 %vm564_vm3, %v895_v47 }
 0x8ab   : > { %v3985_v48 = vpop.f32.mrb[12].mxu1 }
 0x8ac   : > { %v3987_v49 = vpop.f32.mrb[13].mxu1 }
 0x8ad   : > { %v3224_v50 = vpop.f32.mrb[14].mxu1 }
 0x8ae   : > { %v3989_v51 = vpop.f32.mrb[15].mxu1 }
 0x8af   : > { %v3473_v52 = vpack.i.bf16 %v3989_v51, %v3987_v49 }
 0x8bc   : > { %v3231_v53 = vpop.f32.mrb[16].mxu1 }
 0x8bd   : > { %v946_v54 = vpop.f32.mrb[17].mxu1  ;;  %v966_v59 = vsel %vm632_vm5, %v3231_v53, -inf }
 0x8be   : > { %v3232_v55 = vpop.f32.mrb[18].mxu1  ;;  %v960_v56 = vsel %vm625_vm4, %v946_v54, -inf }
 0x8bf   : > { %961 = vmax.xlane.f32.xlu0 %v960_v56  ;;  %v949_v57 = vpop.f32.mrb[19].mxu1 }
 0x8c0   : > { %v963_v58 = vsel %vm625_vm4, %v949_v57, -inf }
 0x8c1   : > { %964 = vmax.xlane.f32.xlu1 %v963_v58 }
 0x8c3   : > { %967 = vmax.xlane.f32.xlu0 %v966_v59 }
 0x94c   : > { %v962_v62 = vpop.xlane.xlu0 %961 }
 0x94d   : > { %v969_v0 = vsub.f32 %v946_v54, %v962_v62 }
 0x94e   : > { %v965_v1 = vpop.xlane.xlu1 %964 }
 0x94f   : > { %v972_v2 = vmul.f32 1.442695, %v969_v0  ;;  %v970_v3 = vsub.f32 %v949_v57, %v965_v1 }
 0x950   : > { %v968_v5 = vpop.xlane.xlu0 %967 }
 0x951   : > { %3564 = vpow2.f32 %v972_v2  ;;  %v974_v6 = vmul.f32 1.442695, %v970_v3  ;;  %v971_v7 = vsub.f32 %v3231_v53, %v968_v5 }
 0x953   : > { %3566 = vpow2.f32 %v974_v6  ;;  %v976_v9 = vmul.f32 1.442695, %v971_v7 }
 0x955   : > { %3568 = vpow2.f32 %v976_v9 }
 0x95b   : > { %v3565_v10 = vpop.eup %3564 }
 0x95c   : > { %v978_v12 = vsel %vm625_vm4, %v3565_v10, 0.0 }
 0x95d   : > { %v3567_v13 = vpop.eup %3566  ;;  %979 = vadd.xlane.f32.xlu0 %v978_v12 }
 0x95e   : > { %v981_v17 = vsel %vm625_vm4, %v3567_v13, 0.0 }
 0x95f   : > { %v3569_v15 = vpop.eup %3568 }
 0x960   : > { %v984_v16 = vsel %vm632_vm5, %v3569_v15, 0.0 }
 0x961   : > { %985 = vadd.xlane.f32.xlu1 %v984_v16  ;;  %982 = vadd.xlane.f32.xlu0 %v981_v17 }
 0x972   : > { %997 = vrot.lane.b32.xlu1 %v3907_v4, %s4476_s16 }
 0x976   : > { %1061 = vrot.lane.b32.xlu1 %v3911_v8, %s4474_s17 }
 0x977   : > { %995 = vrot.lane.b32.xlu0 %v3911_v8, %s4476_s16  ;;  %s4478_s16 = smov 24  }
 0x97a   : > { %1063 = vrot.lane.b32.xlu1 %v3907_v4, %s4474_s17  ;;  %s4494_s17 = smov 72  }
 0x97b   : > { %1057 = vrot.lane.b32.xlu0 %v3911_v8, %s4466_s21 }
 0x97e   : > { %1059 = vrot.lane.b32.xlu1 %v3907_v4, %s4466_s21  ;;  %s4468_s21 = smov 16  }
 0x9ea   : > { %v980_v19 = vpop.xlane.xlu0 %979 }
 0x9eb   : > { %3570 = vrcp.f32 %v980_v19 }
 0x9ee   : > { %v983_v20 = vpop.xlane.xlu0 %982  ;;  %v986_v21 = vpop.xlane.xlu1 %985 }
 0x9ef   : > { %3572 = vrcp.f32 %v983_v20 }
 0x9f0   : > { %3574 = vrcp.f32 %v986_v21 }
 0x9f2   : > { %v996_v22 = vpop.permute.xlu0 %995  ;;  %v998_v23 = vpop.permute.xlu1 %997 }
 0x9f3   : > { %v1007_v24 = vand.u32 %v998_v23, %v3941_v43  ;;  %3233 = vmatprep.subr.bf16.mxu0 %v996_v22  ;;  %v3508_v23 = vld [vmem:[%s4462_s6] sm:$0xff]  }
 0x9f4   : > { %3234 = vmatpush3.bf16.msra.mxu0 %v996_v22 }
 0x9f5   : > { %3235 = vmatprep.subr.bf16.mxu0 %v1007_v24  ;;  %v3571_v25 = vpop.eup %3570 }
 0x9f6   : > { %v1062_v26 = vpop.permute.xlu1 %1061  ;;  %v990_v29 = vmul.f32 %v3571_v25, %v3565_v10  ;;  %v1058_v34 = vpop.permute.xlu0 %1057 }
 0x9f7   : > { %v1072_v35 = vsel %vm564_vm3, %v1062_v26, 0 }
 0x9f8   : > { %3236 = vmatpush3.bf16.msra.mxu0 %v1007_v24  ;;  %v3509_v24 = vld [vmem:[%s4462_s6 + $0x8] sm:$0xff]  }
 0x9f9   : > { %v3573_v27 = vpop.eup %3572  ;;  %3407 = vmatprep.subr.msk.bf16.mxu0 %vm564_vm3, %v1062_v26 }
 0x9fa   : > { %v3575_v28 = vpop.eup %3574  ;;  %v991_v30 = vmul.f32 %v3573_v27, %v3567_v13  ;;  %v1064_v36 = vpop.permute.xlu1 %1063 }
 0x9fb   : > { %v992_v31 = vmul.f32 %v3575_v28, %v3569_v15  ;;  %v1075_v37 = vsel %vm564_vm3, %v1064_v36, 0 }
 0x9fc   : > { %v993_v32 = vpack.c.bf16 %v991_v30, %v990_v29 }
 0x9fd   : > { %v994_v33 = vpack.c.bf16 %v992_v31, %v992_v31 }
 0x9fe   : > { %3237 = vmatprep.mubr.msk.bf16.mxu0 %vm625_vm4, %v993_v32  ;;  %v1060_v38 = vpop.permute.xlu1 %1059 }
 0x9ff   : > { %3238 = vmatmul.mubr.msk.bf16.vlgmr.msra.gmra.mrb[8].mxu0 %vm625_vm4, %v994_v33 }
 0xa00   : > { %3245 = vmatprep.mubr.msk.bf16.mxu0 %vm564_vm3, %v1058_v34 }
 0xa01   : > { %3242 = vmatpush3.bf16.xpose.msra.mxu0 %v1072_v35 }
 0xa02   : > { %3408 = vmatprep.subr.msk.bf16.mxu0 %vm564_vm3, %v1064_v36 }
 0xa09   : > { %3244 = vmatpush3.bf16.xpose.msra.mxu0 %v1075_v37 }
 0xa10   : > { %3246 = vmatmul.mubr.msk.bf16.vlgmr.msra.gmra.mrb[12].mxu0 %vm564_vm3, %v1060_v38 }
 0xad2   : > { %v3239_v39 = vpop.f32.mrb[8].mxu0 }
 0xad3   : > { %v1043_v40 = vpop.f32.mrb[9].mxu0 }
 0xad4   : > { %v3240_v41 = vpop.f32.mrb[10].mxu0 }
 0xad5   : > { %v1046_v42 = vpop.f32.mrb[11].mxu0 }
 0xad6   : > { %v3478_v44 = vpack.i.bf16 %v1046_v42, %v1043_v40 }
 0xae3   : > { %v3247_v45 = vpop.f32.mrb[12].mxu0 }
 0xae4   : > { %v1111_v46 = vpop.f32.mrb[13].mxu0  ;;  %v1131_v55 = vsel %vm632_vm5, %v3247_v45, -inf }
 0xae5   : > { %v3248_v47 = vpop.f32.mrb[14].mxu0  ;;  %v1125_v50 = vsel %vm625_vm4, %v1111_v46, -inf }
 0xae6   : > { %1126 = vmax.xlane.f32.xlu0 %v1125_v50  ;;  %v1114_v53 = vpop.f32.mrb[15].mxu0 }
 0xae7   : > { %v1128_v54 = vsel %vm625_vm4, %v1114_v53, -inf }
 0xae8   : > { %1129 = vmax.xlane.f32.xlu1 %v1128_v54 }
 0xaea   : > { %1132 = vmax.xlane.f32.xlu0 %v1131_v55 }
 0xb73   : > { %v1127_v56 = vpop.xlane.xlu0 %1126 }
 0xb74   : > { %v1134_v57 = vsub.f32 %v1111_v46, %v1127_v56 }
 0xb75   : > { %v1130_v58 = vpop.xlane.xlu1 %1129 }
 0xb76   : > { %v1137_v59 = vmul.f32 1.442695, %v1134_v57  ;;  %v1135_v62 = vsub.f32 %v1114_v53, %v1130_v58 }
 0xb77   : > { %v1133_v0 = vpop.xlane.xlu0 %1132 }
 0xb78   : > { %3576 = vpow2.f32 %v1137_v59  ;;  %v1139_v1 = vmul.f32 1.442695, %v1135_v62  ;;  %v1136_v2 = vsub.f32 %v3247_v45, %v1133_v0 }
 0xb7a   : > { %3578 = vpow2.f32 %v1139_v1  ;;  %v1141_v3 = vmul.f32 1.442695, %v1136_v2 }
 0xb7c   : > { %3580 = vpow2.f32 %v1141_v3 }
 0xb82   : > { %v3577_v5 = vpop.eup %3576 }
 0xb83   : > { %v1143_v6 = vsel %vm625_vm4, %v3577_v5, 0.0 }
 0xb84   : > { %v3579_v7 = vpop.eup %3578  ;;  %1144 = vadd.xlane.f32.xlu0 %v1143_v6 }
 0xb85   : > { %v1146_v12 = vsel %vm625_vm4, %v3579_v7, 0.0 }
 0xb86   : > { %v3581_v9 = vpop.eup %3580 }
 0xb87   : > { %v1149_v10 = vsel %vm632_vm5, %v3581_v9, 0.0 }
 0xb88   : > { %1150 = vadd.xlane.f32.xlu1 %v1149_v10  ;;  %1147 = vadd.xlane.f32.xlu0 %v1146_v12 }
 0xb99   : > { %1162 = vrot.lane.b32.xlu1 %v3907_v4, %s4472_s22 }
 0xb9d   : > { %3474 = vrot.lane.b32.xlu1 %v3473_v52, %s4470_s23 }
 0xb9e   : > { %1160 = vrot.lane.b32.xlu0 %v3911_v8, %s4472_s22 }
 0xba1   : > { %1229 = vrot.lane.b32.xlu1 %v3985_v48, %s4470_s23  ;;  %s323_s23 = sand.u32 1, %s3724_s10  }
 0xba2   : > { %3479 = vrot.lane.b32.xlu0 %v3478_v44, %s4468_s21 }
 0xba5   : > { %1241 = vrot.lane.b32.xlu1 %v3239_v39, %s4468_s21  ;;  %s4495_s21 = smov 104  }
 0xc11   : > { %v1145_v13 = vpop.xlane.xlu0 %1144 }
 0xc12   : > { %3582 = vrcp.f32 %v1145_v13 }
 0xc15   : > { %v1148_v4 = vpop.xlane.xlu0 %1147  ;;  %v1151_v15 = vpop.xlane.xlu1 %1150 }
 0xc16   : > { %3584 = vrcp.f32 %v1148_v4 }
 0xc17   : > { %3586 = vrcp.f32 %v1151_v15 }
 0xc19   : > { %v1161_v16 = vpop.permute.xlu0 %1160  ;;  %v1163_v49 = vpop.permute.xlu1 %1162 }
 0xc1a   : > { %v1172_v51 = vand.u32 %v1163_v49, %v3941_v43  ;;  %3249 = vmatprep.subr.bf16.mxu1 %v1161_v16 }
 0xc1b   : > { %3250 = vmatpush3.bf16.msra.mxu1 %v1161_v16 }
 0xc1c   : > { %3251 = vmatprep.subr.bf16.mxu1 %v1172_v51  ;;  %v3583_v8 = vpop.eup %3582 }
 0xc1d   : > { %v1155_v17 = vmul.f32 %v3583_v8, %v3577_v5  ;;  %v3475_v30 = vpop.permute.xlu1 %3474  ;;  %v3480_v32 = vpop.permute.xlu0 %3479 }
 0xc1e   : > { %v3477_v33 = vunpack.i.h.bf16 %v3475_v30  ;;  %v3476_v34 = vunpack.i.l.bf16 %v3475_v30  ;;  %v3482_v36 = vunpack.i.h.bf16 %v3480_v32  ;;  %v3481_v37 = vunpack.i.l.bf16 %v3480_v32 }
 0xc1f   : > { %3252 = vmatpush3.bf16.msra.mxu1 %v1172_v51 }
 0xc20   : > { %v3585_v48 = vpop.eup %3584  ;;  %3257 = vmatprep.subr.bf16.mxu1 %v3508_v23  ;;  %v1259_v38 = vsel %vm564_vm3, %v3956_v63, %v3477_v33  ;;  %v1258_v39 = vsel %vm564_vm3, %v3954_v61, %v3476_v34  ;;  %v2962_v34 = vld [vmem:[%s4459_s3 + $0x2] ss:$0 sm:$0xff] }
 0xc21   : > { %v3587_v52 = vpop.eup %3586  ;;  %v1156_v19 = vmul.f32 %v3585_v48, %v3579_v7  ;;  %v1230_v31 = vpop.permute.xlu1 %1229  ;;  %v1262_v50 = vsel %vm1261_vm7, %v1258_v39, %v3481_v37  ;;  %v1263_v63 = vsel %vm1261_vm7, %v1259_v38, %v3482_v36 }
 0xc22   : > { %v1157_v20 = vmul.f32 %v3587_v52, %v3581_v9  ;;  %v1260_v41 = vsel %vm564_vm3, %v3952_v60, %v1230_v31  ;;  %v2957_v60 = vld [vmem:[%s4460_s4 + $0x1] ss:$0 sm:$0xff] }
 0xc23   : > { %v1158_v21 = vpack.c.bf16 %v1156_v19, %v1155_v17  ;;  %v3510_v19 = vld [vmem:[%s4463_s7] sm:$0xff]  }
 0xc24   : > { %v1159_v22 = vpack.c.bf16 %v1157_v20, %v1157_v20  ;;  %v3511_v20 = vld [vmem:[%s4463_s7 + $0x8] sm:$0xff]   ;;  %3265 = vmatprep.subr.bf16.mxu0 %v3510_v19 }
 0xc25   : > { %3253 = vmatprep.mubr.msk.bf16.mxu1 %vm625_vm4, %v1158_v21  ;;  %v1242_v35 = vpop.permute.xlu1 %1241  ;;  %3266 = vmatpush3.bf16.msra.mxu0 %v3510_v19  ;;  %v3512_v21 = vld [vmem:[%s4464_s8] sm:$0xff]  }
 0xc26   : > { %3254 = vmatmul.mubr.msk.bf16.vlgmr.msra.gmra.mrb[20].mxu1 %vm625_vm4, %v1159_v22  ;;  %v1264_v44 = vsel %vm1261_vm7, %v1260_v41, %v1242_v35  ;;  %3267 = vmatprep.subr.bf16.mxu0 %v3511_v20  ;;  %v3513_v22 = vld [vmem:[%s4464_s8 + $0x8] sm:$0xff]   ;;  %v2969_v19 = vld [vmem:[%s4460_s4 + $0x3] ss:$0 sm:$0xff] }
 0xc27   : > { %3258 = vmatpush3.bf16.msra.mxu1 %v3508_v23 }
 0xc28   : > { %3259 = vmatprep.subr.bf16.mxu1 %v3509_v24 }
 0xc29   : > { %3268 = vmatpush3.bf16.msra.mxu0 %v3511_v20 }
 0xc2b   : > { %3260 = vmatpush3.bf16.msra.mxu1 %v3509_v24 }
 0xc2c   : > { %3273 = vmatprep.subr.bf16.mxu1 %v3512_v21 }
 0xcf9   : > { %v3255_v25 = vpop.f32.mrb[20].mxu1 }
 0xcfa   : > { %1253 = vrot.lane.b32.xlu1 %v3255_v25, %s4478_s16  ;;  %v1208_v26 = vpop.f32.mrb[21].mxu1 }
 0xcfb   : > { %v3256_v27 = vpop.f32.mrb[22].mxu1 }
 0xcfc   : > { %v1211_v28 = vpop.f32.mrb[23].mxu1 }
 0xcfd   : > { %v3483_v29 = vpack.i.bf16 %v1211_v28, %v1208_v26 }
 0xcff   : > { %3484 = vrot.lane.b32.xlu0 %v3483_v29, %s4478_s16 }
 0xd6c   : > { %v1254_v40 = vpop.permute.xlu1 %1253 }
 0xd6d   : > { %v1268_v47 = vsel %vm1265_vm8, %v1264_v44, %v1254_v40  ;;  %v2963_v40 = vld [vmem:[%s4459_s3 + $0x3] ss:$0 sm:$0xff] }
 0xd6e   : > { %v1270_v55 = vpack.c.bf16 %v1268_v47, %v1268_v47 }
 0xd71   : > { %v3485_v42 = vpop.permute.xlu0 %3484 }
 0xd72   : > { %v3487_v45 = vunpack.i.h.bf16 %v3485_v42  ;;  %v3486_v46 = vunpack.i.l.bf16 %v3485_v42 }
 0xd74   : > { %v1266_v53 = vsel %vm1265_vm8, %v1262_v50, %v3486_v46  ;;  %v1267_v61 = vsel %vm1265_vm8, %v1263_v63, %v3487_v45  ;;  %v3514_v63 = vld [vmem:[%s4464_s8 + $0x10] sm:$0xff]  }
 0xd75   : > { %v1269_v54 = vpack.c.bf16 %v1267_v61, %v1266_v53  ;;  %v3515_v53 = vld [vmem:[%s4464_s8 + $0x18] sm:$0xff]   ;;  %v3516_v61 = vld [vmem:[%s4464_s8 + $0x20] sm:$0xff]  }
 0xd77   : > { %3261 = vmatprep.mubr.msk.bf16.mxu1 %vm423_vm2, %v1269_v54  ;;  %v3517_v54 = vld [vmem:[%s4464_s8 + $0x28] sm:$0xff]  }
 0xd78   : > { %3262 = vmatmul.mubr.msk.bf16.vlgmr.msra.gmra.mrb[24].mxu1 %vm423_vm2, %v1270_v55  ;;  %v3518_v55 = vld [vmem:[%s4464_s8 + $0x30] sm:$0xff]  }
 0xd79   : > { %3274 = vmatpush3.bf16.msra.mxu1 %v3512_v21 }
 0xd7a   : > { %3275 = vmatprep.subr.bf16.mxu1 %v3513_v22 }
 0xd7d   : > { %3276 = vmatpush3.bf16.msra.mxu1 %v3513_v22 }
 0xd7e   : > { %3277 = vmatprep.subr.bf16.mxu1 %v3514_v63 }
 0xd81   : > { %3278 = vmatpush3.bf16.msra.mxu1 %v3514_v63 }
 0xd82   : > { %3279 = vmatprep.subr.bf16.mxu1 %v3515_v53 }
 0xd85   : > { %3280 = vmatpush3.bf16.msra.mxu1 %v3515_v53 }
 0xd86   : > { %3281 = vmatprep.subr.bf16.mxu1 %v3516_v61 }
 0xd89   : > { %3282 = vmatpush3.bf16.msra.mxu1 %v3516_v61 }
 0xd8a   : > { %3283 = vmatprep.subr.bf16.mxu1 %v3517_v54 }
 0xd8d   : > { %3284 = vmatpush3.bf16.msra.mxu1 %v3517_v54 }
 0xd8e   : > { %3285 = vmatprep.subr.bf16.mxu1 %v3518_v55 }
 0xd91   : > { %3286 = vmatpush3.bf16.msra.mxu1 %v3518_v55 }
 0xe4b   : > { %v3263_v56 = vpop.f32.mrb[24].mxu1 }
 0xe4c   : > { %v1332_v57 = vpop.f32.mrb[25].mxu1  ;;  %v1341_v58 = vadd.f32 %v3263_v56, %v2957_v60  ;;  %v2964_v56 = vld [vmem:[%s4460_s4 + $0x2] ss:$0 sm:$0xff] }
 0xe4d   : > { %v1333_v59 = vadd.f32 %v2957_v60, %v1332_v57  ;;  %v3264_v62 = vpop.f32.mrb[26].mxu1 }
 0xe4e   : > { %v1335_v0 = vpop.f32.mrb[27].mxu1  ;;  %v4070_v3 = vadd.f32 %v1341_v58, %v3869_v11 }
 0xe4f   : > { %v4067_v1 = vadd.f32 %v1333_v59, %v3874_v14  ;;  %v1336_v2 = vadd.f32 %v2957_v60, %v1335_v0  ;;  %v3519_v60 = vld [vmem:[%s4464_s8 + $0x38] sm:$0xff]  }
 0xe50   : > { %v1355_v9 = vsel %vm430_vm1, %v4070_v3, 0.0  ;;  %3287 = vmatprep.subr.bf16.mxu1 %v3519_v60 }
 0xe51   : > { %v4073_v5 = vadd.f32 %v1336_v2, %v3878_v18  ;;  %v1349_v6 = vsel %vm423_vm2, %v4067_v1, 0.0  ;;  %3288 = vmatpush3.bf16.msra.mxu1 %v3519_v60 }
 0xe52   : > { %1350 = vadd.xlane.f32.xlu0 %v1349_v6 }
 0xe53   : > { %v1352_v7 = vsel %vm423_vm2, %v4073_v5, 0.0 }
 0xe54   : > { %1353 = vadd.xlane.f32.xlu1 %v1352_v7 }
 0xe56   : > { %1356 = vadd.xlane.f32.xlu0 %v1355_v9 }
 0xedf   : > { %v1351_v14 = vpop.xlane.xlu0 %1350 }
 0xee0   : > { %v1358_v10 = vmul.f32 0.03125, %v1351_v14 }
 0xee1   : > { %v1354_v12 = vpop.xlane.xlu1 %1353 }
 0xee2   : > { %v1361_v11 = vsub.f32 %v4067_v1, %v1358_v10  ;;  %v1359_v13 = vmul.f32 0.03125, %v1354_v12 }
 0xee3   : > { %v1357_v18 = vpop.xlane.xlu0 %1356 }
 0xee4   : > { %v1362_v4 = vsub.f32 %v4073_v5, %v1359_v13  ;;  %v1360_v15 = vmul.f32 0.03125, %v1357_v18  ;;  %v1364_v16 = vmul.f32 %v1361_v11, %v1361_v11 }
 0xee6   : > { %v1363_v49 = vsub.f32 %v4070_v3, %v1360_v15  ;;  %v1367_v51 = vsel %vm423_vm2, %v1364_v16, 0.0  ;;  %v1365_v8 = vmul.f32 %v1362_v4, %v1362_v4 }
 0xee7   : > { %1368 = vadd.xlane.f32.xlu0 %v1367_v51 }
 0xee8   : > { %v1366_v48 = vmul.f32 %v1363_v49, %v1363_v49  ;;  %v1370_v52 = vsel %vm423_vm2, %v1365_v8, 0.0 }
 0xeea   : > { %v1373_v17 = vsel %vm430_vm1, %v1366_v48, 0.0 }
 0xeeb   : > { %1371 = vadd.xlane.f32.xlu0 %v1370_v52  ;;  %1374 = vadd.xlane.f32.xlu1 %v1373_v17 }
 0xf74   : > { %v1369_v23 = vpop.xlane.xlu0 %1368 }
 0xf75   : > { %v1376_v24 = vmul.f32 0.03125, %v1369_v23 }
 0xf77   : > { %v1379_v25 = vadd.f32 1e-06, %v1376_v24 }
 0xf78   : > { %v1375_v26 = vpop.xlane.xlu1 %1374  ;;  %v1372_v27 = vpop.xlane.xlu0 %1371 }
 0xf79   : > { %3588 = vrsqrt.f32 %v1379_v25  ;;  %v1378_v28 = vmul.f32 0.03125, %v1375_v26  ;;  %v1377_v29 = vmul.f32 0.03125, %v1372_v27 }
 0xf7b   : > { %v1381_v30 = vadd.f32 1e-06, %v1378_v28  ;;  %v1380_v31 = vadd.f32 1e-06, %v1377_v29 }
 0xf7d   : > { %3590 = vrsqrt.f32 %v1381_v30 }
 0xf7e   : > { %3592 = vrsqrt.f32 %v1380_v31 }
 0xf83   : > { %v3589_v32 = vpop.eup %3588 }
 0xf84   : > { %v1385_v33 = vmul.f32 %v3589_v32, %v1361_v11 }
 0xf86   : > { %v1392_v39 = vmul.f32 %v2962_v34, %v1385_v33 }
 0xf87   : > { %v3591_v35 = vpop.eup %3590 }
 0xf88   : > { %v3593_v36 = vpop.eup %3592  ;;  %v1387_v37 = vmul.f32 %v3591_v35, %v1363_v49  ;;  %v1399_v45 = vadd.f32 %v2963_v40, %v1392_v39 }
 0xf89   : > { %v1386_v38 = vmul.f32 %v3593_v36, %v1362_v4 }
 0xf8a   : > { %v1394_v41 = vmul.f32 %v2962_v34, %v1387_v37 }
 0xf8b   : > { %v1393_v42 = vmul.f32 %v2962_v34, %v1386_v38 }
 0xf8c   : > { %v1401_v44 = vadd.f32 %v2963_v40, %v1394_v41 }
 0xf8d   : > { %v1400_v46 = vadd.f32 %v2963_v40, %v1393_v42 }
 0xf8e   : > { %v1403_v47 = vpack.c.bf16 %v1401_v44, %v1401_v44 }
 0xf8f   : > { %v1402_v50 = vpack.c.bf16 %v1400_v46, %v1399_v45  ;;  %v3520_v46 = vld [vmem:[%s4461_s5 + $0x10] sm:$0xff]  }
 0xf90   : > { %3293 = vmatprep.subr.bf16.mxu0 %v3520_v46 }
 0xf91   : > { %3269 = vmatprep.mubr.msk.bf16.mxu0 %vm423_vm2, %v1402_v50 }
 0xf92   : > { %3270 = vmatmul.mubr.msk.bf16.vlgmr.msra.gmra.mrb[16].mxu0 %vm423_vm2, %v1403_v47  ;;  %v3521_v47 = vld [vmem:[%s4461_s5 + $0x18] sm:$0xff]  }
 0xf93   : > { %3294 = vmatpush3.bf16.msra.mxu0 %v3520_v46 }
 0xf94   : > { %3295 = vmatprep.subr.bf16.mxu0 %v3521_v47 }
 0xf97   : > { %3296 = vmatpush3.bf16.msra.mxu0 %v3521_v47 }
0x1065   : > { %v3271_v57 = vpop.f32.mrb[16].mxu0 }
0x1066   : > { %v1474_v58 = vadd.f32 %v3271_v57, %v2964_v56  ;;  %v1465_v59 = vpop.f32.mrb[17].mxu0 }
0x1067   : > { %v1466_v62 = vadd.f32 %v2964_v56, %v1465_v59  ;;  %v3272_v0 = vpop.f32.mrb[18].mxu0  ;;  %v2978_v59 = vld [vmem:[%s4459_s3 + $0x4] ss:$0 sm:$0xff] }
0x1068   : > { %v1484_v2 = vmul.f32 0.70710677, %v1474_v58  ;;  %v1468_v6 = vpop.f32.mrb[19].mxu0  ;;  %v1481_v4 = vmul.f32 0.5, %v1474_v58 }
0x1069   : > { %v1482_v7 = vmul.f32 0.70710677, %v1466_v62  ;;  %v1469_v9 = vadd.f32 %v2964_v56, %v1468_v6  ;;  %v1479_v15 = vmul.f32 0.5, %v1466_v62 }
0x106a   : > { %3594 = verf.f32 %v1484_v2 }
0x106b   : > { %3596 = verf.f32 %v1482_v7  ;;  %v1483_v14 = vmul.f32 0.70710677, %v1469_v9  ;;  %v1480_v16 = vmul.f32 0.5, %v1469_v9  ;;  %v2979_v9 = vld [vmem:[%s4459_s3 + $0x5] ss:$0 sm:$0xff] }
0x106d   : > { %3598 = verf.f32 %v1483_v14 }
0x1074   : > { %v3595_v10 = vpop.eup %3594 }
0x1075   : > { %v3597_v12 = vpop.eup %3596  ;;  %v1490_v11 = vadd.f32 1.0, %v3595_v10 }
0x1076   : > { %v1488_v13 = vadd.f32 1.0, %v3597_v12 }
0x1077   : > { %v3599_v18 = vpop.eup %3598  ;;  %v1493_v51 = vmul.f32 %v1490_v11, %v1481_v4 }
0x1078   : > { %v1489_v49 = vadd.f32 1.0, %v3599_v18  ;;  %v1491_v8 = vmul.f32 %v1488_v13, %v1479_v15 }
0x1079   : > { %v1495_v17 = vpack.c.bf16 %v1493_v51, %v1493_v51 }
0x107a   : > { %v1492_v48 = vmul.f32 %v1489_v49, %v1480_v16  ;;  %v2985_v16 = vld [vmem:[%s4460_s4 + $0x4] ss:$0 sm:$0xff] }
0x107c   : > { %v1494_v52 = vpack.c.bf16 %v1492_v48, %v1491_v8 }
0x107e   : > { %3289 = vmatprep.mubr.bf16.mxu1 %v1494_v52 }
0x107f   : > { %3290 = vmatmul.mubr.bf16.vlgmr.msra.gmra.mrb[28].mxu1 %v1495_v17 }
0x1152   : > { %v3291_v20 = vpop.f32.mrb[28].mxu1 }
0x1153   : > { %v1599_v21 = vpop.f32.mrb[29].mxu1  ;;  %v1608_v22 = vadd.f32 %v3291_v20, %v2969_v19 }
0x1154   : > { %v1600_v23 = vadd.f32 %v2969_v19, %v1599_v21  ;;  %v3292_v24 = vpop.f32.mrb[30].mxu1 }
0x1155   : > { %v1602_v25 = vpop.f32.mrb[31].mxu1  ;;  %v4135_v28 = vadd.f32 %v1608_v22, %v4070_v3 }
0x1156   : > { %v4132_v26 = vadd.f32 %v1600_v23, %v4067_v1  ;;  %v1603_v27 = vadd.f32 %v2969_v19, %v1602_v25 }
0x1157   : > { %v1626_v32 = vsel %vm430_vm1, %v4135_v28, 0.0 }
0x1158   : > { %v4138_v29 = vadd.f32 %v1603_v27, %v4073_v5  ;;  %v1620_v30 = vsel %vm423_vm2, %v4132_v26, 0.0 }
0x1159   : > { %1621 = vadd.xlane.f32.xlu0 %v1620_v30 }
0x115a   : > { %v1623_v31 = vsel %vm423_vm2, %v4138_v29, 0.0 }
0x115b   : > { %1624 = vadd.xlane.f32.xlu1 %v1623_v31 }
0x115d   : > { %1627 = vadd.xlane.f32.xlu0 %v1626_v32 }
0x11e6   : > { %v1622_v1 = vpop.xlane.xlu0 %1621 }
0x11e7   : > { %v1629_v33 = vmul.f32 0.03125, %v1622_v1 }
0x11e8   : > { %v1625_v34 = vpop.xlane.xlu1 %1624 }
0x11e9   : > { %v1632_v3 = vsub.f32 %v4132_v26, %v1629_v33  ;;  %v1630_v35 = vmul.f32 0.03125, %v1625_v34 }
0x11ea   : > { %v1628_v5 = vpop.xlane.xlu0 %1627 }
0x11eb   : > { %v1633_v36 = vsub.f32 %v4138_v29, %v1630_v35  ;;  %v1631_v37 = vmul.f32 0.03125, %v1628_v5  ;;  %v1635_v38 = vmul.f32 %v1632_v3, %v1632_v3 }
0x11ed   : > { %v1634_v39 = vsub.f32 %v4135_v28, %v1631_v37  ;;  %v1638_v40 = vsel %vm423_vm2, %v1635_v38, 0.0  ;;  %v1636_v41 = vmul.f32 %v1633_v36, %v1633_v36 }
0x11ee   : > { %1639 = vadd.xlane.f32.xlu1 %v1638_v40 }
0x11ef   : > { %v1641_v42 = vsel %vm423_vm2, %v1636_v41, 0.0  ;;  %v1637_v44 = vmul.f32 %v1634_v39, %v1634_v39 }
0x11f0   : > { %1642 = vadd.xlane.f32.xlu0 %v1641_v42 }
0x11f1   : > { %v1644_v45 = vsel %vm430_vm1, %v1637_v44, 0.0 }
0x11f2   : > { %1645 = vadd.xlane.f32.xlu1 %v1644_v45 }
0x127b   : > { %v1640_v50 = vpop.xlane.xlu1 %1639 }
0x127c   : > { %v1647_v63 = vmul.f32 0.03125, %v1640_v50 }
0x127d   : > { %v1643_v53 = vpop.xlane.xlu0 %1642 }
0x127e   : > { %v1650_v61 = vadd.f32 1e-06, %v1647_v63  ;;  %v1648_v54 = vmul.f32 0.03125, %v1643_v53 }
0x127f   : > { %v1646_v55 = vpop.xlane.xlu1 %1645 }
0x1280   : > { %3600 = vrsqrt.f32 %v1650_v61  ;;  %v1651_v60 = vadd.f32 1e-06, %v1648_v54  ;;  %v1649_v56 = vmul.f32 0.03125, %v1646_v55 }
0x1282   : > { %3602 = vrsqrt.f32 %v1651_v60  ;;  %v1652_v57 = vadd.f32 1e-06, %v1649_v56 }
0x1284   : > { %3604 = vrsqrt.f32 %v1652_v57 }
0x128a   : > { %v3601_v58 = vpop.eup %3600 }
0x128b   : > { %v1656_v62 = vmul.f32 %v3601_v58, %v1632_v3 }
0x128c   : > { %v3603_v0 = vpop.eup %3602 }
0x128d   : > { %v1657_v2 = vmul.f32 %v3603_v0, %v1633_v36  ;;  %v1663_v6 = vmul.f32 %v2978_v59, %v1656_v62 }
0x128e   : > { %v3605_v7 = vpop.eup %3604 }
0x128f   : > { %v1658_v14 = vmul.f32 %v3605_v7, %v1634_v39  ;;  %v1664_v10 = vmul.f32 %v2978_v59, %v1657_v2  ;;  %v1670_v12 = vadd.f32 %v2979_v9, %v1663_v6 }
0x1291   : > { %v1671_v11 = vadd.f32 %v2979_v9, %v1664_v10  ;;  %v1665_v13 = vmul.f32 %v2978_v59, %v1658_v14 }
0x1293   : > { %v1673_v18 = vpack.c.bf16 %v1671_v11, %v1670_v12  ;;  %v1672_v4 = vadd.f32 %v2979_v9, %v1665_v13 }
0x1295   : > { %3297 = vmatprep.mubr.msk.bf16.mxu0 %vm423_vm2, %v1673_v18  ;;  %v1674_v15 = vpack.c.bf16 %v1672_v4, %v1672_v4 }
0x1297   : > { %3298 = vmatmul.mubr.msk.bf16.vlgmr.msra.gmra.mrb[20].mxu0 %vm423_vm2, %v1674_v15 }
0x136a   : > { %v3299_v49 = vpop.f32.mrb[20].mxu0 }
0x136b   : > { %v1747_v51 = vadd.f32 %v3299_v49, %v2985_v16  ;;  %v1738_v8 = vpop.f32.mrb[21].mxu0 }
0x136c   : > { %v3300_v48 = vpop.f32.mrb[22].mxu0  ;;  %v1739_v19 = vadd.f32 %v2985_v16, %v1738_v8 }
0x136d   : > { %v4169_v52 = vpack.c.bf16 %v1747_v51, %v1747_v51  ;;  %v1741_v17 = vpop.f32.mrb[23].mxu0 }
0x136e   : > { %v1742_v20 = vadd.f32 %v2985_v16, %v1741_v17 }
0x136f   : > { %1758 = vrot.lane.b32.xlu1 %v4169_v52, %s3734_s24 }
0x1370   : > { %v4173_v21 = vpack.c.bf16 %v1742_v20, %v1739_v19 }
0x1372   : > { %1756 = vrot.lane.b32.xlu0 %v4173_v21, %s3734_s24  ;;  %3305 = vmatprep.mubr.msk.bf16.mxu0 %vm564_vm3, %v4173_v21  ;;  %s4490_s24 = smov 56  }
0x1373   : > { %1921 = vrot.lane.b32.xlu1 %v4173_v21, %s3737_s27 }
0x1376   : > { %1917 = vrot.lane.b32.xlu0 %v4173_v21, %s3736_s26 }
0x1377   : > { %1923 = vrot.lane.b32.xlu1 %v4169_v52, %s3737_s27  ;;  %s4493_s27 = smov 48  }
0x137b   : > { %1919 = vrot.lane.b32.xlu1 %v4169_v52, %s3736_s26  ;;  %s4492_s26 = smov 112  }
0x13e1   : > { %v1759_v22 = vpop.permute.xlu1 %1758 }
0x13e2   : > { %v1770_v32 = vsel %vm564_vm3, %v1759_v22, 0 }
0x13e4   : > { %v1757_v23 = vpop.permute.xlu0 %1756 }
0x13e5   : > { %v1767_v24 = vsel %vm564_vm3, %v1757_v23, 0  ;;  %v1922_v25 = vpop.permute.xlu1 %1921  ;;  %3409 = vmatprep.subr.msk.bf16.mxu0 %vm564_vm3, %v1757_v23 }
0x13e6   : > { %v1932_v27 = vsel %vm564_vm3, %v1922_v25, 0  ;;  %3302 = vmatpush3.bf16.xpose.msra.mxu0 %v1767_v24  ;;  %3411 = vmatprep.subr.msk.bf16.mxu1 %vm564_vm3, %v1922_v25 }
0x13e7   : > { %3410 = vmatprep.subr.msk.bf16.mxu0 %vm564_vm3, %v1759_v22  ;;  %3318 = vmatpush3.bf16.xpose.msra.mxu1 %v1932_v27 }
0x13e8   : > { %v1918_v30 = vpop.permute.xlu0 %1917 }
0x13e9   : > { %v1924_v31 = vpop.permute.xlu1 %1923  ;;  %3321 = vmatprep.mubr.msk.bf16.mxu1 %vm564_vm3, %v1918_v30 }
0x13ea   : > { %3412 = vmatprep.subr.msk.bf16.mxu1 %vm564_vm3, %v1924_v31  ;;  %v1935_v1 = vsel %vm564_vm3, %v1924_v31, 0 }
0x13ed   : > { %v1920_v33 = vpop.permute.xlu1 %1919 }
0x13ee   : > { %3304 = vmatpush3.bf16.xpose.msra.mxu0 %v1770_v32 }
0x13ef   : > { %3320 = vmatpush3.bf16.xpose.msra.mxu1 %v1935_v1 }
0x13f5   : > { %3306 = vmatmul.mubr.msk.bf16.vlgmr.msra.gmra.mrb[24].mxu0 %vm564_vm3, %v4169_v52 }
0x13f6   : > { %3322 = vmatmul.mubr.msk.bf16.vlgmr.msra.gmra.mrb[32].mxu1 %vm564_vm3, %v1920_v33 }
0x14c8   : > { %v3307_v34 = vpop.f32.mrb[24].mxu0 }
0x14c9   : > { %v1806_v3 = vpop.f32.mrb[25].mxu0  ;;  %v3323_v35 = vpop.f32.mrb[32].mxu1  ;;  %v1826_v42 = vsel %vm632_vm5, %v3307_v34, -inf }
0x14ca   : > { %v3308_v5 = vpop.f32.mrb[26].mxu0  ;;  %v1971_v36 = vpop.f32.mrb[33].mxu1  ;;  %v1820_v37 = vsel %vm625_vm4, %v1806_v3, -inf  ;;  %v1991_v44 = vsel %vm632_vm5, %v3323_v35, -inf }
0x14cb   : > { %v3324_v38 = vpop.f32.mrb[34].mxu1  ;;  %1821 = vmax.xlane.f32.xlu0 %v1820_v37  ;;  %v1809_v39 = vpop.f32.mrb[27].mxu0  ;;  %v1985_v45 = vsel %vm625_vm4, %v1971_v36, -inf }
0x14cc   : > { %v1974_v40 = vpop.f32.mrb[35].mxu1  ;;  %v1823_v41 = vsel %vm625_vm4, %v1809_v39, -inf }
0x14cd   : > { %1824 = vmax.xlane.f32.xlu1 %v1823_v41  ;;  %v1988_v46 = vsel %vm625_vm4, %v1974_v40, -inf }
0x14cf   : > { %1827 = vmax.xlane.f32.xlu0 %v1826_v42 }
0x14d1   : > { %1992 = vmax.xlane.f32.xlu1 %v1991_v44 }
0x14d3   : > { %1986 = vmax.xlane.f32.xlu0 %v1985_v45 }
0x14d7   : > { %1989 = vmax.xlane.f32.xlu0 %v1988_v46 }
0x1558   : > { %v1822_v47 = vpop.xlane.xlu0 %1821 }
0x1559   : > { %v1829_v50 = vsub.f32 %v1806_v3, %v1822_v47 }
0x155a   : > { %v1825_v63 = vpop.xlane.xlu1 %1824 }
0x155b   : > { %v1830_v53 = vsub.f32 %v1809_v39, %v1825_v63  ;;  %v1832_v55 = vmul.f32 1.442695, %v1829_v50 }
0x155c   : > { %v1828_v61 = vpop.xlane.xlu0 %1827 }
0x155d   : > { %v1831_v54 = vsub.f32 %v3307_v34, %v1828_v61  ;;  %v1834_v18 = vmul.f32 1.442695, %v1830_v53 }
0x155e   : > { %v1993_v60 = vpop.xlane.xlu1 %1992 }
0x155f   : > { %v1836_v56 = vmul.f32 1.442695, %v1831_v54  ;;  %v1996_v57 = vsub.f32 %v3323_v35, %v1993_v60 }
0x1560   : > { %v1987_v9 = vpop.xlane.xlu0 %1986 }
0x1561   : > { %3606 = vpow2.f32 %v1836_v56  ;;  %v2001_v58 = vmul.f32 1.442695, %v1996_v57  ;;  %v1994_v12 = vsub.f32 %v1971_v36, %v1987_v9 }
0x1562   : > { %3608 = vpow2.f32 %v1832_v55 }
0x1563   : > { %3610 = vpow2.f32 %v2001_v58  ;;  %v1997_v13 = vmul.f32 1.442695, %v1994_v12 }
0x1564   : > { %v1990_v14 = vpop.xlane.xlu0 %1989 }
0x1565   : > { %v1995_v10 = vsub.f32 %v1974_v40, %v1990_v14 }
0x1567   : > { %v1999_v11 = vmul.f32 1.442695, %v1995_v10 }
0x1569   : > { %3612 = vpow2.f32 %v1999_v11 }
0x156a   : > { %3614 = vpow2.f32 %v1997_v13 }
0x156b   : > { %v3607_v59 = vpop.eup %3606  ;;  %3616 = vpow2.f32 %v1834_v18 }
0x156c   : > { %v3609_v62 = vpop.eup %3608  ;;  %v1844_v0 = vsel %vm632_vm5, %v3607_v59, 0.0 }
0x156d   : > { %v4206_v2 = vpop.eup %3610  ;;  %1845 = vadd.xlane.f32.xlu0 %v1844_v0  ;;  %v1838_v7 = vsel %vm625_vm4, %v3609_v62, 0.0 }
0x156e   : > { %v2009_v6 = vsel %vm632_vm5, %v4206_v2, 0.0 }
0x156f   : > { %2010 = vadd.xlane.f32.xlu1 %v2009_v6 }
0x1571   : > { %1839 = vadd.xlane.f32.xlu0 %v1838_v7 }
0x1573   : > { %v3613_v4 = vpop.eup %3612 }
0x1574   : > { %v3615_v15 = vpop.eup %3614  ;;  %v2006_v16 = vsel %vm625_vm4, %v3613_v4, 0.0 }
0x1575   : > { %v2003_v49 = vsel %vm625_vm4, %v3615_v15, 0.0  ;;  %v3617_v51 = vpop.eup %3616 }
0x1576   : > { %v1841_v8 = vsel %vm625_vm4, %v3617_v51, 0.0 }
0x1580   : > { %1857 = vrot.lane.b32.xlu1 %v4169_v52, %s3735_s25 }
0x1584   : > { %2020 = vrot.lane.b32.xlu1 %v4173_v21, %s4490_s24 }
0x1587   : > { %1855 = vrot.lane.b32.xlu0 %v4173_v21, %s3735_s25  ;;  %s4491_s25 = smov 80  }
0x15a6   : > { %2007 = vadd.xlane.f32.xlu0 %v2006_v16 }
0x15a8   : > { %2004 = vadd.xlane.f32.xlu1 %v2003_v49 }
0x15ac   : > { %1842 = vadd.xlane.f32.xlu1 %v1841_v8 }
0x15bc   : > { %2086 = vrot.lane.b32.xlu0 %v4173_v21, %s4491_s25 }
0x15bd   : > { %2022 = vrot.lane.b32.xlu1 %v4169_v52, %s4490_s24  ;;  %s2927_s24 = sshll.u32 %s323_s23, 4 }
0x15c0   : > { %2082 = vrot.lane.b32.xlu0 %v4173_v21, %s4492_s26 }
0x15c1   : > { %2088 = vrot.lane.b32.xlu1 %v4169_v52, %s4491_s25  ;;  %s4499_s25 = smov 24  }
0x15c5   : > { %2084 = vrot.lane.b32.xlu1 %v4169_v52, %s4492_s26 }
0x15fa   : > { %v1846_v48 = vpop.xlane.xlu0 %1845 }
0x15fb   : > { %3618 = vrcp.f32 %v1846_v48 }
0x15fc   : > { %v2011_v17 = vpop.xlane.xlu1 %2010 }
0x15fe   : > { %v1840_v19 = vpop.xlane.xlu0 %1839 }
0x15ff   : > { %3620 = vrcp.f32 %v1840_v19 }
0x1600   : > { %v1858_v20 = vpop.permute.xlu1 %1857 }
0x1601   : > { %v1867_v23 = vand.u32 %v1858_v20, %v3941_v43 }
0x1602   : > { %v1856_v22 = vpop.permute.xlu0 %1855 }
0x1603   : > { %3309 = vmatprep.subr.bf16.mxu0 %v1856_v22 }
0x1604   : > { %3310 = vmatpush3.bf16.msra.mxu0 %v1856_v22  ;;  %v2021_v24 = vpop.permute.xlu1 %2020 }
0x1605   : > { %3311 = vmatprep.subr.bf16.mxu0 %v1867_v23  ;;  %v3619_v31 = vpop.eup %3618 }
0x1606   : > { %v1852_v3 = vmul.f32 %v3619_v31, %v3607_v59 }
0x1608   : > { %3312 = vmatpush3.bf16.msra.mxu0 %v1867_v23  ;;  %v1854_v40 = vpack.c.bf16 %v1852_v3, %v1852_v3 }
0x1609   : > { %3325 = vmatprep.subr.bf16.mxu0 %v2021_v24  ;;  %v3621_v32 = vpop.eup %3620 }
0x160a   : > { %v1850_v35 = vmul.f32 %v3621_v32, %v3609_v62 }
0x1633   : > { %v2008_v27 = vpop.xlane.xlu0 %2007 }
0x1635   : > { %v2005_v25 = vpop.xlane.xlu1 %2004 }
0x1636   : > { %3622 = vrcp.f32 %v2005_v25 }
0x1637   : > { %3624 = vrcp.f32 %v2008_v27  ;;  %v2087_v46 = vpop.permute.xlu0 %2086 }
0x1638   : > { %v2097_v63 = vsel %vm564_vm3, %v2087_v46, 0 }
0x1639   : > { %v1843_v30 = vpop.xlane.xlu1 %1842 }
0x163a   : > { %3626 = vrcp.f32 %v1843_v30 }
0x163b   : > { %3628 = vrcp.f32 %v2011_v17  ;;  %v2083_v50 = vpop.permute.xlu0 %2082 }
0x163d   : > { %v2023_v37 = vpop.permute.xlu1 %2022 }
0x163e   : > { %v2032_v44 = vand.u32 %v2023_v37, %v3941_v43 }
0x1640   : > { %v3623_v1 = vpop.eup %3622 }
0x1641   : > { %v3625_v33 = vpop.eup %3624  ;;  %v2015_v36 = vmul.f32 %v3623_v1, %v3615_v15  ;;  %v2089_v53 = vpop.permute.xlu1 %2088 }
0x1642   : > { %v2016_v39 = vmul.f32 %v3625_v33, %v3613_v4  ;;  %v2100_v61 = vsel %vm564_vm3, %v2089_v53, 0 }
0x1644   : > { %v3627_v34 = vpop.eup %3626  ;;  %v2018_v42 = vpack.c.bf16 %v2016_v39, %v2015_v36 }
0x1645   : > { %v1851_v5 = vmul.f32 %v3627_v34, %v3617_v51  ;;  %v3629_v41 = vpop.eup %3628  ;;  %v2085_v54 = vpop.permute.xlu1 %2084 }
0x1646   : > { %v2017_v45 = vmul.f32 %v3629_v41, %v4206_v2 }
0x1647   : > { %v1853_v38 = vpack.c.bf16 %v1851_v5, %v1850_v35 }
0x1648   : > { %v2019_v47 = vpack.c.bf16 %v2017_v45, %v2017_v45 }
0x1649   : > { %3313 = vmatprep.mubr.msk.bf16.mxu0 %vm625_vm4, %v1853_v38 }
0x164a   : > { %3314 = vmatmul.mubr.msk.bf16.vlgmr.msra.gmra.mrb[28].mxu0 %vm625_vm4, %v1854_v40 }
0x164b   : > { %3326 = vmatpush3.bf16.msra.mxu0 %v2021_v24  ;;  %3329 = vmatprep.mubr.msk.bf16.mxu0 %vm625_vm4, %v2018_v42 }
0x164c   : > { %3327 = vmatprep.subr.bf16.mxu0 %v2032_v44 }
0x164f   : > { %3328 = vmatpush3.bf16.msra.mxu0 %v2032_v44 }
0x1650   : > { %3413 = vmatprep.subr.msk.bf16.mxu0 %vm564_vm3, %v2087_v46 }
0x1652   : > { %3330 = vmatmul.mubr.msk.bf16.vlgmr.msra.gmra.mrb[32].mxu0 %vm625_vm4, %v2019_v47 }
0x1653   : > { %3337 = vmatprep.mubr.msk.bf16.mxu0 %vm564_vm3, %v2083_v50 }
0x1658   : > { %3334 = vmatpush3.bf16.xpose.msra.mxu0 %v2097_v63 }
0x1659   : > { %3414 = vmatprep.subr.msk.bf16.mxu0 %vm564_vm3, %v2089_v53 }
0x1660   : > { %3336 = vmatpush3.bf16.xpose.msra.mxu0 %v2100_v61 }
0x1667   : > { %3338 = vmatmul.mubr.msk.bf16.vlgmr.msra.gmra.mrb[36].mxu0 %vm564_vm3, %v2085_v54 }
0x171d   : > { %v4243_v55 = vpop.f32.mrb[28].mxu0 }
0x171e   : > { %v4245_v60 = vpop.f32.mrb[29].mxu0 }
0x171f   : > { %v3316_v56 = vpop.f32.mrb[30].mxu0 }
0x1720   : > { %v4247_v57 = vpop.f32.mrb[31].mxu0 }
0x1725   : > { %v4249_v58 = vpop.f32.mrb[32].mxu0 }
0x1726   : > { %v4251_v59 = vpop.f32.mrb[33].mxu0 }
0x1727   : > { %v3332_v62 = vpop.f32.mrb[34].mxu0 }
0x1728   : > { %v4253_v0 = vpop.f32.mrb[35].mxu0 }
0x1729   : > { %v3488_v2 = vpack.i.bf16 %v4253_v0, %v4251_v59 }
0x173a   : > { %v3339_v6 = vpop.f32.mrb[36].mxu0 }
0x173b   : > { %v2136_v7 = vpop.f32.mrb[37].mxu0  ;;  %v2156_v11 = vsel %vm632_vm5, %v3339_v6, -inf }
0x173c   : > { %v3340_v9 = vpop.f32.mrb[38].mxu0  ;;  %v2150_v14 = vsel %vm625_vm4, %v2136_v7, -inf }
0x173d   : > { %2151 = vmax.xlane.f32.xlu0 %v2150_v14  ;;  %v2139_v10 = vpop.f32.mrb[39].mxu0 }
0x173e   : > { %v2153_v12 = vsel %vm625_vm4, %v2139_v10, -inf }
0x173f   : > { %2154 = vmax.xlane.f32.xlu1 %v2153_v12 }
0x1741   : > { %2157 = vmax.xlane.f32.xlu0 %v2156_v11 }
0x17ca   : > { %v2152_v13 = vpop.xlane.xlu0 %2151 }
0x17cb   : > { %v2159_v18 = vsub.f32 %v2136_v7, %v2152_v13 }
0x17cc   : > { %v2155_v4 = vpop.xlane.xlu1 %2154 }
0x17cd   : > { %v2162_v15 = vmul.f32 1.442695, %v2159_v18  ;;  %v2160_v16 = vsub.f32 %v2139_v10, %v2155_v4 }
0x17ce   : > { %v2158_v49 = vpop.xlane.xlu0 %2157 }
0x17cf   : > { %3630 = vpow2.f32 %v2162_v15  ;;  %v2164_v51 = vmul.f32 1.442695, %v2160_v16  ;;  %v2161_v8 = vsub.f32 %v3339_v6, %v2158_v49 }
0x17d1   : > { %3632 = vpow2.f32 %v2164_v51  ;;  %v2166_v48 = vmul.f32 1.442695, %v2161_v8 }
0x17d3   : > { %3634 = vpow2.f32 %v2166_v48 }
0x17d9   : > { %v3631_v17 = vpop.eup %3630 }
0x17da   : > { %v2168_v19 = vsel %vm625_vm4, %v3631_v17, 0.0 }
0x17db   : > { %v3633_v20 = vpop.eup %3632  ;;  %2169 = vadd.xlane.f32.xlu0 %v2168_v19 }
0x17dc   : > { %v2171_v24 = vsel %vm625_vm4, %v3633_v20, 0.0 }
0x17dd   : > { %v3635_v22 = vpop.eup %3634 }
0x17de   : > { %v2174_v23 = vsel %vm632_vm5, %v3635_v22, 0.0 }
0x17df   : > { %2175 = vadd.xlane.f32.xlu1 %v2174_v23  ;;  %2172 = vadd.xlane.f32.xlu0 %v2171_v24 }
0x17f0   : > { %2187 = vrot.lane.b32.xlu1 %v4169_v52, %s4493_s27 }
0x17f4   : > { %2251 = vrot.lane.b32.xlu1 %v4173_v21, %s4494_s17 }
0x17f5   : > { %2185 = vrot.lane.b32.xlu0 %v4173_v21, %s4493_s27 }
0x17f8   : > { %2253 = vrot.lane.b32.xlu1 %v4169_v52, %s4494_s17 }
0x17f9   : > { %2247 = vrot.lane.b32.xlu0 %v4173_v21, %s4495_s21 }
0x17fc   : > { %2249 = vrot.lane.b32.xlu1 %v4169_v52, %s4495_s21  ;;  %s3061_s21 = sshll.u32 %s3822_s13, 8  ;;  %s4414_s13 = scalar_lea.sflag [#allocation3], %s323_s23 }
0x17fd   : > { %s4408_s0 = scalar_lea.hbm %s4465_s9, %s3061_s21 }
0x1868   : > { %v2170_v25 = vpop.xlane.xlu0 %2169 }
0x1869   : > { %3636 = vrcp.f32 %v2170_v25 }
0x186c   : > { %v2173_v27 = vpop.xlane.xlu0 %2172  ;;  %v2176_v30 = vpop.xlane.xlu1 %2175 }
0x186d   : > { %3638 = vrcp.f32 %v2173_v27 }
0x186e   : > { %3640 = vrcp.f32 %v2176_v30 }
0x1870   : > { %v2186_v31 = vpop.permute.xlu0 %2185  ;;  %v2188_v32 = vpop.permute.xlu1 %2187 }
0x1871   : > { %v2197_v1 = vand.u32 %v2188_v32, %v3941_v43  ;;  %3341 = vmatprep.subr.bf16.mxu1 %v2186_v31  ;;  %v3523_v32 = vld [vmem:[%s4462_s6 + $0x18] sm:$0xff]  }
0x1872   : > { %3342 = vmatpush3.bf16.msra.mxu1 %v2186_v31 }
0x1873   : > { %3343 = vmatprep.subr.bf16.mxu1 %v2197_v1  ;;  %v3637_v33 = vpop.eup %3636 }
0x1874   : > { %v2252_v34 = vpop.permute.xlu1 %2251  ;;  %v2180_v5 = vmul.f32 %v3637_v33, %v3631_v17  ;;  %v2248_v40 = vpop.permute.xlu0 %2247 }
0x1875   : > { %v2262_v41 = vsel %vm564_vm3, %v2252_v34, 0 }
0x1876   : > { %3344 = vmatpush3.bf16.msra.mxu1 %v2197_v1 }
0x1877   : > { %v3639_v3 = vpop.eup %3638  ;;  %3415 = vmatprep.subr.msk.bf16.mxu1 %vm564_vm3, %v2252_v34 }
0x1878   : > { %v3641_v35 = vpop.eup %3640  ;;  %v2181_v36 = vmul.f32 %v3639_v3, %v3633_v20  ;;  %v2254_v42 = vpop.permute.xlu1 %2253 }
0x1879   : > { %v2182_v37 = vmul.f32 %v3641_v35, %v3635_v22  ;;  %v2265_v44 = vsel %vm564_vm3, %v2254_v42, 0 }
0x187a   : > { %v2183_v38 = vpack.c.bf16 %v2181_v36, %v2180_v5 }
0x187b   : > { %v2184_v39 = vpack.c.bf16 %v2182_v37, %v2182_v37 }
0x187c   : > { %3345 = vmatprep.mubr.msk.bf16.mxu1 %vm625_vm4, %v2183_v38  ;;  %v2250_v45 = vpop.permute.xlu1 %2249 }
0x187d   : > { %3346 = vmatmul.mubr.msk.bf16.vlgmr.msra.gmra.mrb[36].mxu1 %vm625_vm4, %v2184_v39 }
0x187e   : > { %3353 = vmatprep.mubr.msk.bf16.mxu1 %vm564_vm3, %v2248_v40 }
0x187f   : > { %3350 = vmatpush3.bf16.xpose.msra.mxu1 %v2262_v41 }
0x1880   : > { %3416 = vmatprep.subr.msk.bf16.mxu1 %vm564_vm3, %v2254_v42 }
0x1887   : > { %3352 = vmatpush3.bf16.xpose.msra.mxu1 %v2265_v44 }
0x188e   : > { %3354 = vmatmul.mubr.msk.bf16.vlgmr.msra.gmra.mrb[40].mxu1 %vm564_vm3, %v2250_v45 }
0x1950   : > { %v3347_v46 = vpop.f32.mrb[36].mxu1 }
0x1951   : > { %v2233_v47 = vpop.f32.mrb[37].mxu1 }
0x1952   : > { %v3348_v50 = vpop.f32.mrb[38].mxu1 }
0x1953   : > { %v2236_v63 = vpop.f32.mrb[39].mxu1 }
0x1954   : > { %v3493_v53 = vpack.i.bf16 %v2236_v63, %v2233_v47 }
0x1961   : > { %v3355_v61 = vpop.f32.mrb[40].mxu1 }
0x1962   : > { %v2301_v54 = vpop.f32.mrb[41].mxu1  ;;  %v2321_v9 = vsel %vm632_vm5, %v3355_v61, -inf }
0x1963   : > { %v3356_v56 = vpop.f32.mrb[42].mxu1  ;;  %v2315_v62 = vsel %vm625_vm4, %v2301_v54, -inf }
0x1964   : > { %2316 = vmax.xlane.f32.xlu0 %v2315_v62  ;;  %v2304_v6 = vpop.f32.mrb[43].mxu1 }
0x1965   : > { %v2318_v7 = vsel %vm625_vm4, %v2304_v6, -inf }
0x1966   : > { %2319 = vmax.xlane.f32.xlu1 %v2318_v7 }
0x1968   : > { %2322 = vmax.xlane.f32.xlu0 %v2321_v9 }
0x19f1   : > { %v2317_v14 = vpop.xlane.xlu0 %2316 }
0x19f2   : > { %v2324_v10 = vsub.f32 %v2301_v54, %v2317_v14 }
0x19f3   : > { %v2320_v12 = vpop.xlane.xlu1 %2319 }
0x19f4   : > { %v2327_v11 = vmul.f32 1.442695, %v2324_v10  ;;  %v2325_v13 = vsub.f32 %v2304_v6, %v2320_v12 }
0x19f5   : > { %v2323_v18 = vpop.xlane.xlu0 %2322 }
0x19f6   : > { %3642 = vpow2.f32 %v2327_v11  ;;  %v2329_v4 = vmul.f32 1.442695, %v2325_v13  ;;  %v2326_v15 = vsub.f32 %v3355_v61, %v2323_v18 }
0x19f8   : > { %3644 = vpow2.f32 %v2329_v4  ;;  %v2331_v16 = vmul.f32 1.442695, %v2326_v15 }
0x19fa   : > { %3646 = vpow2.f32 %v2331_v16 }
0x1a00   : > { %v3643_v49 = vpop.eup %3642 }
0x1a01   : > { %v2333_v51 = vsel %vm625_vm4, %v3643_v49, 0.0 }
0x1a02   : > { %v3645_v8 = vpop.eup %3644  ;;  %2334 = vadd.xlane.f32.xlu0 %v2333_v51 }
0x1a03   : > { %v2336_v19 = vsel %vm625_vm4, %v3645_v8, 0.0 }
0x1a04   : > { %v3647_v48 = vpop.eup %3646 }
0x1a05   : > { %v2339_v17 = vsel %vm632_vm5, %v3647_v48, 0.0 }
0x1a06   : > { %2340 = vadd.xlane.f32.xlu1 %v2339_v17  ;;  %2337 = vadd.xlane.f32.xlu0 %v2336_v19 }
0x1a17   : > { %2352 = vrot.lane.b32.xlu1 %v4169_v52, %s4496_s28 }
0x1a1b   : > { %3489 = vrot.lane.b32.xlu1 %v3488_v2, %s4497_s29 }
0x1a1c   : > { %2350 = vrot.lane.b32.xlu0 %v4173_v21, %s4496_s28  ;;  %s325_s28 = scalar_lea.vmem [#allocation2], %s2927_s24 }
0x1a1f   : > { %2419 = vrot.lane.b32.xlu1 %v4249_v58, %s4497_s29 }
0x1a20   : > { %3494 = vrot.lane.b32.xlu0 %v3493_v53, %s4498_s14 }
0x1a23   : > { %2431 = vrot.lane.b32.xlu1 %v3347_v46, %s4498_s14  ;;  %s2861_s14 = sshll.u32 %s325_s28, 4  ;;  %s4411_s14 = int_to_ptr.vmem [resolvable:$true] %s2861_s14 }
0x1a24   : > { %s3670_s24 = scalar_lea.vmem %s4411_s14, 256 }
0x1a25   : > { %p3671_p11 = scmp.ne.s32.totalorder %s4411_s14, %s3670_s24 }
0x1a27   : > { %p3672_p12 = pnand %p3671_p11, %p3839_p5 }
0x1a29   : > { %p3673_p13 = pneg %p3672_p12 }
0x1a8f   : > { %v2335_v20 = vpop.xlane.xlu0 %2334 }
0x1a90   : > { %3648 = vrcp.f32 %v2335_v20 }
0x1a93   : > { %v2338_v22 = vpop.xlane.xlu0 %2337  ;;  %v2341_v23 = vpop.xlane.xlu1 %2340 }
0x1a94   : > { %3650 = vrcp.f32 %v2338_v22 }
0x1a95   : > { %3652 = vrcp.f32 %v2341_v23 }
0x1a97   : > { %v2351_v52 = vpop.permute.xlu0 %2350  ;;  %v2353_v24 = vpop.permute.xlu1 %2352 }
0x1a98   : > { %v2362_v59 = vand.u32 %v2353_v24, %v3941_v43  ;;  %3357 = vmatprep.subr.bf16.mxu0 %v2351_v52  ;;  %v3522_v43 = vld [vmem:[%s4462_s6 + $0x10] sm:$0xff]  }
0x1a99   : > { %3358 = vmatpush3.bf16.msra.mxu0 %v2351_v52 }
0x1a9a   : > { %3359 = vmatprep.subr.bf16.mxu0 %v2362_v59  ;;  %v3649_v21 = vpop.eup %3648 }
0x1a9b   : > { %v2345_v2 = vmul.f32 %v3649_v21, %v3643_v49  ;;  %v3490_v5 = vpop.permute.xlu1 %3489  ;;  %v3495_v37 = vpop.permute.xlu0 %3494 }
0x1a9c   : > { %v3492_v38 = vunpack.i.h.bf16 %v3490_v5  ;;  %v3491_v39 = vunpack.i.l.bf16 %v3490_v5  ;;  %v3497_v41 = vunpack.i.h.bf16 %v3495_v37  ;;  %v3496_v42 = vunpack.i.l.bf16 %v3495_v37 }
0x1a9d   : > { %3360 = vmatpush3.bf16.msra.mxu0 %v2362_v59 }
0x1a9e   : > { %v3651_v58 = vpop.eup %3650  ;;  %3365 = vmatprep.subr.bf16.mxu0 %v3522_v43  ;;  %v2449_v44 = vsel %vm564_vm3, %v4247_v57, %v3492_v38  ;;  %v2448_v45 = vsel %vm564_vm3, %v4245_v60, %v3491_v39  ;;  %v3016_v38 = vld [vmem:[%s4459_s3 + $0x6] ss:$0 sm:$0xff] }
0x1a9f   : > { %v3653_v0 = vpop.eup %3652  ;;  %v2346_v25 = vmul.f32 %v3651_v58, %v3645_v8  ;;  %v2420_v36 = vpop.permute.xlu1 %2419  ;;  %v2451_v56 = vsel %vm1261_vm7, %v2448_v45, %v3496_v42  ;;  %v2452_v62 = vsel %vm1261_vm7, %v2449_v44, %v3497_v41  ;;  %v3017_v45 = vld [vmem:[%s4459_s3 + $0x7] ss:$0 sm:$0xff] }
0x1aa0   : > { %v2347_v27 = vmul.f32 %v3653_v0, %v3647_v48  ;;  %v2450_v47 = vsel %vm564_vm3, %v4243_v55, %v2420_v36  ;;  %v3011_v55 = vld [vmem:[%s4460_s4 + $0x5] ss:$0 sm:$0xff] }
0x1aa1   : > { %v2348_v30 = vpack.c.bf16 %v2346_v25, %v2345_v2  ;;  %v3524_v2 = vld [vmem:[%s4463_s7 + $0x10] sm:$0xff]   ;;  %v3525_v25 = vld [vmem:[%s4463_s7 + $0x18] sm:$0xff]  }
0x1aa2   : > { %v2349_v31 = vpack.c.bf16 %v2347_v27, %v2347_v27  ;;  %3373 = vmatprep.subr.bf16.mxu1 %v3524_v2  ;;  %v3526_v27 = vld [vmem:[%s4464_s8 + $0x40] sm:$0xff]  }
0x1aa3   : > { %3361 = vmatprep.mubr.msk.bf16.mxu0 %vm625_vm4, %v2348_v30  ;;  %v2432_v40 = vpop.permute.xlu1 %2431  ;;  %3374 = vmatpush3.bf16.msra.mxu1 %v3524_v2  ;;  %v3527_v30 = vld [vmem:[%s4464_s8 + $0x48] sm:$0xff]  }
0x1aa4   : > { %3362 = vmatmul.mubr.msk.bf16.vlgmr.msra.gmra.mrb[40].mxu0 %vm625_vm4, %v2349_v31  ;;  %v2453_v63 = vsel %vm1261_vm7, %v2450_v47, %v2432_v40  ;;  %3375 = vmatprep.subr.bf16.mxu1 %v3525_v25 }
0x1aa5   : > { %3366 = vmatpush3.bf16.msra.mxu0 %v3522_v43 }
0x1aa6   : > { %3367 = vmatprep.subr.bf16.mxu0 %v3523_v32 }
0x1aa7   : > { %3376 = vmatpush3.bf16.msra.mxu1 %v3525_v25 }
0x1aa9   : > { %3368 = vmatpush3.bf16.msra.mxu0 %v3523_v32 }
0x1aaa   : > { %3381 = vmatprep.subr.bf16.mxu0 %v3526_v27 }
0x1b77   : > { %v3363_v1 = vpop.f32.mrb[40].mxu0 }
0x1b78   : > { %2443 = vrot.lane.b32.xlu1 %v3363_v1, %s4499_s25  ;;  %v2398_v33 = vpop.f32.mrb[41].mxu0 }
0x1b79   : > { %v3364_v34 = vpop.f32.mrb[42].mxu0 }
0x1b7a   : > { %v2401_v3 = vpop.f32.mrb[43].mxu0 }
0x1b7b   : > { %v3498_v35 = vpack.i.bf16 %v2401_v3, %v2398_v33 }
0x1b7d   : > { %3499 = vrot.lane.b32.xlu0 %v3498_v35, %s4499_s25  ;;  %s3749_s25 = smov [#allocation2]  }
0x1b7e   : > { %s3674_s26 = sshll.u32 %s3749_s25, 4  ;;  %s3675_s26 = int_to_ptr.vmem [resolvable:$false] %s3674_s26 }
0x1b7f   : > { %s3676_s27 = scalar_lea.vmem %s3675_s26, 512  ;;  %p3677_p0 = scmp.lt.s32.totalorder %s4411_s14, %s3675_s26 }
0x1b80   : > { %p3678_p1 = scmp.lt.s32.totalorder %s3676_s27, %s3670_s24 }
0x1b82   : > { %p3679_p2 = por %p3678_p1, %p3677_p0 }
0x1b84   : > { %p3680_p3 = pnand %p3679_p2, %p3673_p13 }
0x1bea   : > { %v2444_v46 = vpop.permute.xlu1 %2443 }
0x1beb   : > { %v2456_v54 = vsel %vm1265_vm8, %v2453_v63, %v2444_v46 }
0x1bec   : > { %v2458_v7 = vpack.c.bf16 %v2456_v54, %v2456_v54 }
0x1bef   : > { %v3500_v50 = vpop.permute.xlu0 %3499 }
0x1bf0   : > { %v3502_v53 = vunpack.i.h.bf16 %v3500_v50  ;;  %v3501_v61 = vunpack.i.l.bf16 %v3500_v50 }
0x1bf2   : > { %v2454_v57 = vsel %vm1265_vm8, %v2451_v56, %v3501_v61  ;;  %v2455_v6 = vsel %vm1265_vm8, %v2452_v62, %v3502_v53  ;;  %v3528_v56 = vld [vmem:[%s4464_s8 + $0x50] sm:$0xff]   ;;  %v3529_v62 = vld [vmem:[%s4464_s8 + $0x58] sm:$0xff]  }
0x1bf3   : > { %v2457_v60 = vpack.c.bf16 %v2455_v6, %v2454_v57  ;;  %v3530_v57 = vld [vmem:[%s4464_s8 + $0x60] sm:$0xff]   ;;  %v3531_v6 = vld [vmem:[%s4464_s8 + $0x68] sm:$0xff]  }
0x1bf5   : > { %3369 = vmatprep.mubr.msk.bf16.mxu0 %vm423_vm2, %v2457_v60  ;;  %v3532_v60 = vld [vmem:[%s4464_s8 + $0x70] sm:$0xff]  }
0x1bf6   : > { %3370 = vmatmul.mubr.msk.bf16.vlgmr.msra.gmra.mrb[44].mxu0 %vm423_vm2, %v2458_v7  ;;  %v3533_v7 = vld [vmem:[%s4464_s8 + $0x78] sm:$0xff]  }
0x1bf7   : > { %3382 = vmatpush3.bf16.msra.mxu0 %v3526_v27 }
0x1bf8   : > { %3383 = vmatprep.subr.bf16.mxu0 %v3527_v30 }
0x1bfb   : > { %3384 = vmatpush3.bf16.msra.mxu0 %v3527_v30 }
0x1bfc   : > { %3385 = vmatprep.subr.bf16.mxu0 %v3528_v56 }
0x1bff   : > { %3386 = vmatpush3.bf16.msra.mxu0 %v3528_v56 }
0x1c00   : > { %3387 = vmatprep.subr.bf16.mxu0 %v3529_v62 }
0x1c03   : > { %3388 = vmatpush3.bf16.msra.mxu0 %v3529_v62 }
0x1c04   : > { %3389 = vmatprep.subr.bf16.mxu0 %v3530_v57 }
0x1c07   : > { %3390 = vmatpush3.bf16.msra.mxu0 %v3530_v57 }
0x1c08   : > { %3391 = vmatprep.subr.bf16.mxu0 %v3531_v6 }
0x1c0b   : > { %3392 = vmatpush3.bf16.msra.mxu0 %v3531_v6 }
0x1c0c   : > { %3393 = vmatprep.subr.bf16.mxu0 %v3532_v60 }
0x1c0f   : > { %3394 = vmatpush3.bf16.msra.mxu0 %v3532_v60 }
0x1c10   : > { %3395 = vmatprep.subr.bf16.mxu0 %v3533_v7 }
0x1c13   : > { %3396 = vmatpush3.bf16.msra.mxu0 %v3533_v7 }
0x1cc9   : > { %v3371_v9 = vpop.f32.mrb[44].mxu0 }
0x1cca   : > { %v2521_v14 = vpop.f32.mrb[45].mxu0  ;;  %v2530_v10 = vadd.f32 %v3371_v9, %v3011_v55 }
0x1ccb   : > { %v2522_v12 = vadd.f32 %v3011_v55, %v2521_v14  ;;  %v3372_v11 = vpop.f32.mrb[46].mxu0 }
0x1ccc   : > { %v2524_v13 = vpop.f32.mrb[47].mxu0  ;;  %v2537_v15 = vadd.f32 %v2530_v10, %v4135_v28 }
0x1ccd   : > { %v4331_v18 = vadd.f32 %v2522_v12, %v4132_v26  ;;  %v2525_v4 = vadd.f32 %v3011_v55, %v2524_v13  ;;  %v3023_v55 = vld [vmem:[%s4460_s4 + $0x6] ss:$0 sm:$0xff] }
0x1cce   : > { %v2544_v8 = vsel %vm430_vm1, %v2537_v15, 0.0 }
0x1ccf   : > { %v4335_v16 = vadd.f32 %v2525_v4, %v4138_v29  ;;  %v2538_v49 = vsel %vm423_vm2, %v4331_v18, 0.0 }
0x1cd0   : > { %2539 = vadd.xlane.f32.xlu0 %v2538_v49 }
0x1cd1   : > { %v2541_v51 = vsel %vm423_vm2, %v4335_v16, 0.0 }
0x1cd2   : > { %2542 = vadd.xlane.f32.xlu1 %v2541_v51 }
0x1cd4   : > { %2545 = vadd.xlane.f32.xlu0 %v2544_v8 }
0x1d5d   : > { %v2540_v48 = vpop.xlane.xlu0 %2539 }
0x1d5e   : > { %v2547_v26 = vmul.f32 0.03125, %v2540_v48 }
0x1d5f   : > { %v2543_v17 = vpop.xlane.xlu1 %2542 }
0x1d60   : > { %v2550_v19 = vsub.f32 %v4331_v18, %v2547_v26  ;;  %v2548_v28 = vmul.f32 0.03125, %v2543_v17 }
0x1d61   : > { %v2546_v20 = vpop.xlane.xlu0 %2545 }
0x1d62   : > { %v2551_v29 = vsub.f32 %v4335_v16, %v2548_v28  ;;  %v2549_v22 = vmul.f32 0.03125, %v2546_v20  ;;  %v2553_v23 = vmul.f32 %v2550_v19, %v2550_v19 }
0x1d64   : > { %v2552_v52 = vsub.f32 %v2537_v15, %v2549_v22  ;;  %v2556_v24 = vsel %vm423_vm2, %v2553_v23, 0.0  ;;  %v2554_v59 = vmul.f32 %v2551_v29, %v2551_v29 }
0x1d65   : > { %2557 = vadd.xlane.f32.xlu0 %v2556_v24 }
0x1d66   : > { %v2555_v21 = vmul.f32 %v2552_v52, %v2552_v52  ;;  %v2559_v58 = vsel %vm423_vm2, %v2554_v59, 0.0 }
0x1d68   : > { %v2562_v0 = vsel %vm430_vm1, %v2555_v21, 0.0 }
0x1d69   : > { %2560 = vadd.xlane.f32.xlu0 %v2559_v58  ;;  %2563 = vadd.xlane.f32.xlu1 %v2562_v0  ;;  %v3045_v58 = vld [vmem:[%s4460_s4 + $0x7] ss:$0 sm:$0xff] }
0x1df2   : > { %v2558_v31 = vpop.xlane.xlu0 %2557 }
0x1df3   : > { %v2565_v43 = vmul.f32 0.03125, %v2558_v31 }
0x1df5   : > { %v2568_v32 = vadd.f32 1e-06, %v2565_v43 }
0x1df6   : > { %v2564_v1 = vpop.xlane.xlu1 %2563  ;;  %v2561_v33 = vpop.xlane.xlu0 %2560 }
0x1df7   : > { %3654 = vrsqrt.f32 %v2568_v32  ;;  %v2567_v34 = vmul.f32 0.03125, %v2564_v1  ;;  %v2566_v3 = vmul.f32 0.03125, %v2561_v33 }
0x1df9   : > { %v2570_v35 = vadd.f32 1e-06, %v2567_v34  ;;  %v2569_v5 = vadd.f32 1e-06, %v2566_v3 }
0x1dfb   : > { %3656 = vrsqrt.f32 %v2570_v35 }
0x1dfc   : > { %3658 = vrsqrt.f32 %v2569_v5 }
0x1e01   : > { %v3655_v36 = vpop.eup %3654 }
0x1e02   : > { %v2574_v37 = vmul.f32 %v3655_v36, %v2550_v19 }
0x1e04   : > { %v2581_v44 = vmul.f32 %v3016_v38, %v2574_v37 }
0x1e05   : > { %v3657_v39 = vpop.eup %3656 }
0x1e06   : > { %v3659_v40 = vpop.eup %3658  ;;  %v2576_v41 = vmul.f32 %v3657_v39, %v2552_v52  ;;  %v2588_v63 = vadd.f32 %v3017_v45, %v2581_v44 }
0x1e07   : > { %v2575_v42 = vmul.f32 %v3659_v40, %v2551_v29 }
0x1e08   : > { %v2583_v46 = vmul.f32 %v3016_v38, %v2576_v41 }
0x1e09   : > { %v2582_v47 = vmul.f32 %v3016_v38, %v2575_v42 }
0x1e0a   : > { %v2590_v50 = vadd.f32 %v3017_v45, %v2583_v46 }
0x1e0b   : > { %v2589_v53 = vadd.f32 %v3017_v45, %v2582_v47 }
0x1e0c   : > { %v2592_v61 = vpack.c.bf16 %v2590_v50, %v2590_v50  ;;  %v3054_v50 = vld [vmem:[%s4459_s3 + $0x8] ss:$0 sm:$0xff] }
0x1e0d   : > { %v2591_v54 = vpack.c.bf16 %v2589_v53, %v2588_v63 }
0x1e0f   : > { %3377 = vmatprep.mubr.msk.bf16.mxu1 %vm423_vm2, %v2591_v54 }
0x1e10   : > { %3378 = vmatmul.mubr.msk.bf16.vlgmr.msra.gmra.mrb[44].mxu1 %vm423_vm2, %v2592_v61  ;;  %v3055_v61 = vld [vmem:[%s4459_s3 + $0x9] ss:$0 sm:$0xff] }
0x1ee3   : > { %v3379_v9 = vpop.f32.mrb[44].mxu1 }
0x1ee4   : > { %v2664_v14 = vadd.f32 %v3379_v9, %v3023_v55  ;;  %v2655_v10 = vpop.f32.mrb[45].mxu1 }
0x1ee5   : > { %v2656_v12 = vadd.f32 %v3023_v55, %v2655_v10  ;;  %v3380_v11 = vpop.f32.mrb[46].mxu1 }
0x1ee6   : > { %v2674_v13 = vmul.f32 0.70710677, %v2664_v14  ;;  %v2658_v4 = vpop.f32.mrb[47].mxu1  ;;  %v2671_v28 = vmul.f32 0.5, %v2664_v14 }
0x1ee7   : > { %v2672_v15 = vmul.f32 0.70710677, %v2656_v12  ;;  %v2659_v49 = vadd.f32 %v3023_v55, %v2658_v4  ;;  %v2669_v20 = vmul.f32 0.5, %v2656_v12 }
0x1ee8   : > { %3660 = verf.f32 %v2674_v13 }
0x1ee9   : > { %3662 = verf.f32 %v2672_v15  ;;  %v2673_v51 = vmul.f32 0.70710677, %v2659_v49  ;;  %v2670_v29 = vmul.f32 0.5, %v2659_v49 }
0x1eeb   : > { %3664 = verf.f32 %v2673_v51 }
0x1ef2   : > { %v3661_v8 = vpop.eup %3660 }
0x1ef3   : > { %v3663_v48 = vpop.eup %3662  ;;  %v2680_v26 = vadd.f32 1.0, %v3661_v8 }
0x1ef4   : > { %v2678_v17 = vadd.f32 1.0, %v3663_v48 }
0x1ef5   : > { %v3665_v19 = vpop.eup %3664  ;;  %v2683_v23 = vmul.f32 %v2680_v26, %v2671_v28 }
0x1ef6   : > { %v2679_v22 = vadd.f32 1.0, %v3665_v19  ;;  %v2681_v52 = vmul.f32 %v2678_v17, %v2669_v20 }
0x1ef7   : > { %v2685_v21 = vpack.c.bf16 %v2683_v23, %v2683_v23 }
0x1ef8   : > { %v2682_v24 = vmul.f32 %v2679_v22, %v2670_v29 }
0x1efa   : > { %v2684_v59 = vpack.c.bf16 %v2682_v24, %v2681_v52 }
0x1efc   : > { %3397 = vmatprep.mubr.bf16.mxu0 %v2684_v59 }
0x1efd   : > { %3398 = vmatmul.mubr.bf16.vlgmr.msra.gmra.mrb[48].mxu0 %v2685_v21 }
0x1fd0   : > { %v3399_v0 = vpop.f32.mrb[48].mxu0 }
0x1fd1   : > { %v2790_v2 = vpop.f32.mrb[49].mxu0 }
0x1fd2   : > { %v2791_v25 = vadd.f32 %v3045_v58, %v2790_v2  ;;  %v3400_v27 = vpop.f32.mrb[50].mxu0 }
0x1fd3   : > { %v2793_v30 = vpop.f32.mrb[51].mxu0 }
0x1fd4   : > { %v2803_v31 = vadd.f32 %v2791_v25, %v4331_v18  ;;  %v2794_v43 = vadd.f32 %v3045_v58, %v2793_v30 }
0x1fd6   : > { %v2804_v32 = vadd.f32 %v2794_v43, %v4335_v16  ;;  %v2807_v1 = vsel %vm423_vm2, %v2803_v31, 0.0 }
0x1fd7   : > { %2808 = vadd.xlane.f32.xlu0 %v2807_v1 }
0x1fd8   : > { %v2810_v33 = vsel %vm423_vm2, %v2804_v32, 0.0 }
0x1fd9   : > { %2811 = vadd.xlane.f32.xlu1 %v2810_v33 }
0x2064   : > { %v2809_v34 = vpop.xlane.xlu0 %2808 }
0x2065   : > { %v2813_v3 = vmul.f32 0.03125, %v2809_v34 }
0x2066   : > { %v2812_v35 = vpop.xlane.xlu1 %2811 }
0x2067   : > { %v2815_v5 = vsub.f32 %v2803_v31, %v2813_v3  ;;  %v2814_v36 = vmul.f32 0.03125, %v2812_v35 }
0x2069   : > { %v2816_v37 = vsub.f32 %v2804_v32, %v2814_v36  ;;  %v2817_v38 = vmul.f32 %v2815_v5, %v2815_v5 }
0x206b   : > { %v2819_v39 = vsel %vm423_vm2, %v2817_v38, 0.0  ;;  %v2818_v18 = vmul.f32 %v2816_v37, %v2816_v37 }
0x206c   : > { %2820 = vadd.xlane.f32.xlu0 %v2819_v39 }
0x206d   : > { %v2822_v16 = vsel %vm423_vm2, %v2818_v18, 0.0 }
0x206e   : > { %2823 = vadd.xlane.f32.xlu1 %v2822_v16 }
0x20f9   : > { %v2821_v40 = vpop.xlane.xlu0 %2820 }
0x20fa   : > { %v2825_v41 = vmul.f32 0.03125, %v2821_v40 }
0x20fb   : > { %v2824_v42 = vpop.xlane.xlu1 %2823 }
0x20fc   : > { %v2827_v44 = vadd.f32 1e-06, %v2825_v41  ;;  %v2826_v45 = vmul.f32 0.03125, %v2824_v42 }
0x20fe   : > { %3666 = vrsqrt.f32 %v2827_v44  ;;  %v2828_v46 = vadd.f32 1e-06, %v2826_v45 }
0x2100   : > { %3668 = vrsqrt.f32 %v2828_v46 }
0x2108   : > { %v3667_v47 = vpop.eup %3666 }
0x2109   : > { %v2831_v63 = vmul.f32 %v3667_v47, %v2815_v5 }
0x210a   : > { %v3669_v53 = vpop.eup %3668 }
0x210b   : > { %v2837_v54 = vmul.f32 %v3054_v50, %v2831_v63  ;;  %v2832_v56 = vmul.f32 %v3669_v53, %v2816_v37 }
0x210d   : > { %v2843_v62 = vadd.f32 %v3055_v61, %v2837_v54  ;;  %v2838_v57 = vmul.f32 %v3054_v50, %v2832_v56 }
0x210f   : > { %v2844_v6 = vadd.f32 %v3055_v61, %v2838_v57  ;;  %2845 = vst.msk [vmem:[%s325_s28] sm:$0xff] %vm423_vm2, %v2843_v62 }
0x2111   : > { %2846 = vst.msk [vmem:[%s325_s28 + $0x8] sm:$0xff] %vm423_vm2, %v2844_v6 }
0x2112   : > { %3683 = shalt.err (!%p3680_p3)
}
0x2113   : > { %s3684_s23 = scalar_lea.hbm %s4408_s0, 256  ;;  %s3688_s28 = scalar_lea.hbm %s4465_s9, 512 }
0x2114   : > { %p3685_p4 = scmp.ne.s32.totalorder %s4408_s0, %s3684_s23  ;;  %p3689_p9 = scmp.lt.u32.totalorder %s4408_s0, %s4465_s9 }
0x2115   : > { %p3690_p10 = scmp.lt.u32.totalorder %s3688_s28, %s3684_s23  ;;  %p3692_p12 = scmp.lt.u32.totalorder %s3684_s23, %s4408_s0 }
0x2116   : > { %p3686_p7 = pnand %p3685_p4, %p3839_p5 }
0x2117   : > { %p3691_p11 = por %p3690_p10, %p3689_p9 }
0x2118   : > { %p3687_p8 = pneg %p3686_p7 }
0x2119   : > { %p3693_p13 = por %p3692_p12, %p3691_p11 }
0x211b   : > { %p3694_p0 = pnand %p3693_p13, %p3687_p8 }
0x211d   : > { %3697 = shalt.err (!%p3694_p0)
}
0x211e   : > { %s3750_s24 = smov 128  }
0x211f   : > { %3418 = dma.vmem_to_hbm [thread:$0]  (%p3839_p5), %s4411_s14, 256, %s4408_s0, %s4414_s13, %s3750_s24, %s3750_s24, %s4497_s29  }
0x2120 PF: > { %p3424_p1 = scmp.ge.s32.totalorder %s3732_s12, 2  ;;  %s2876_s25 = sand.u32 1, %s3720_s30  }
0x2121   : > { %s2877_s26 = scalar_lea.sflag [#allocation3], %s2876_s25 }
0x2122   : > { %p3421_p2 = pnand %p3424_p1, %p3843_p6 }
0x2124   : > { %3715 = dma.done.wait (!%p3421_p2), %s2877_s26, 256  }
0x2125   : > { %3717 = vsyncadd (!%p3421_p2), %s2877_s26, 4294967040  ;;  %p19_p3 = scmp.ge.s32.totalorder %s3826_s15, 4   ;;  %s4500_s30 = smov %s3724_s10 }
0x2126   : > { %s4501_s10 = smov %s3728_s11  ;;  %s4502_s11 = smov %s3837_s18 }
0x2127   : > { %s4503_s12 = smov %s3826_s15  ;;  %21 = sbr.rel (!%p19_p3) target bundleno = 5 (0x5), region = 96 }
0x212e   :  { %2882 = vsyncpa [#allocation3], 1 }
0x212f   :  { %2884 = vsyncpa [#allocation3 + $0x1], 1 }

</bundles_post_ra>
